<compile_context>
chip_gen: v7x
topology: tpu7x:2x2x1
jax: 0.10.0
libtpu: 0.0.40
codegen_flags: <defaults>
</compile_context>

<pallas_src>
import functools

import jax
import jax.numpy as jnp
import numpy as np
from jax import lax
from jax.experimental import pallas as pl
from jax.experimental.pallas import tpu as pltpu

HIDDEN = 768          # nn.BatchNorm1d(768) / nn.Linear(768, ...)
NUM_CLASSES = 3       # logits.view(-1, 3)
BN_EPS = 1e-5
# Cap on the full-batch bf16 activation cache held in VMEM across phases.
_CACHE_CAP_BYTES = 12 * (1 << 20)


def _pick_group_tile(g):
    """Examples are processed 3 candidate rows at a time; tile the example axis.

    gm must be a multiple of 8 (so 3*gm keeps sublane alignment) unless the
    tile covers the whole example axis.  512 examples/tile keeps the pipeline
    within the scoped-VMEM budget on v5e/v6e/v7x (raise on v6e if desired)."""
    for gm in (512, 256, 128, 64, 32, 16, 8):
        if g % gm == 0:
            return gm
    return g  # small / irregular batch: single whole-array tile


def _vmem_limit_bytes(rows_tile, num_t, cache_in_vmem):
    """Explicit scoped-VMEM request (v5e defaults to only ~16 MiB scoped)."""
    h = HIDDEN
    est = 2 * rows_tile * h * 4                    # pooled tile, double-buffered f32
    est += 2 * h * h * 2                           # resident bf16 W0 (pipeline buffers)
    est += (num_t * rows_tile * h * 2) if cache_in_vmem else (8 * h * 2)
    est += 3 * rows_tile * h * 4                   # y / h f32 intermediates
    est += 16 * h * 4 + (1 << 20)                  # params, outputs, small scratch
    est += 8 << 20                                 # Mosaic internal scratch margin
    return int(min(max(est, 32 << 20), 60 << 20))  # stay under v7x's 64 MiB physical


# ---------------------------------------------------------------------------
# Fused kernel, grid = (phase, row-tile):
#   phase 0: accumulate BN batch statistics (sum, sum^2) over the (3*gm, 768)
#            slab, cache the slab as bf16 in VMEM, finalize folded scale/shift.
#   phase 1: BN -> merged bf16 GEMM 768x768 -> ReLU -> VPU w1 lane-reduce ->
#            (3*gm, 1) logits column + fused CrossEntropy (mean) accumulation.
# ---------------------------------------------------------------------------
def fused_head_loss_kernel(
    pooled_ref,    # (3*gm, H) f32   interleaved rows: e0c0, e0c1, e0c2, e1c0, ...
    gamma_ref,     # (1, H)    f32   BN weight
    beta_ref,      # (1, H)    f32   BN bias
    w0_ref,        # (H, H)    bf16  classifier0 weight (in, out), grid-invariant
    b0_ref,        # (1, H)    f32   classifier0 bias
    w1_ref,        # (1, H)    f32   classifier1 weight as a lane-dense row
    b1_ref,        # (1,)      f32   classifier1 bias (SMEM scalar)
    labels_ref,    # (3*gm, 1) int32 label of the example owning each row
    zcol_ref,      # (3*gm, 1) f32   output: raw logits column
    loss_ref,      # (1, 1)    f32   output: mean CE loss
    sum_sc, sumsq_sc, scale_sc, shift_sc, loss_sc, z_sc, cache_ref,
    *, inv_rows, inv_groups, cache_in_vmem):
    phase = pl.program_id(0)
    t = pl.program_id(1)
    last_t = pl.num_programs(1) - 1
    rows = zcol_ref.shape[0]                      # 3 * gm (static)

    # ---------------- phase 0: BN batch statistics + bf16 cache ----------------
    @pl.when(phase == 0)
    def _stats_pass():
        @pl.when(t == 0)
        def _init():
            sum_sc[...] = jnp.zeros_like(sum_sc)
            sumsq_sc[...] = jnp.zeros_like(sumsq_sc)
            loss_sc[...] = jnp.zeros_like(loss_sc)
            z_sc[...] = jnp.zeros_like(z_sc)      # zero shift-padding rows once

        x = pooled_ref[...]                       # (rows, H) f32, single HBM pass
        sum_sc[...] += jnp.sum(x, axis=0, keepdims=True)
        sumsq_sc[...] += jnp.sum(x * x, axis=0, keepdims=True)
        if cache_in_vmem:
            cache_ref[t] = x.astype(jnp.bfloat16)  # phase 1 reads VMEM, not HBM

        @pl.when(t == last_t)
        def _finalize():
            mean = sum_sc[...] * inv_rows
            var = sumsq_sc[...] * inv_rows - mean * mean   # biased (training BN)
            rstd = lax.rsqrt(var + BN_EPS)
            scale = gamma_ref[...] * rstd                  # fold affine once
            scale_sc[...] = scale
            shift_sc[...] = beta_ref[...] - mean * scale

    # ---------------- phase 1: head + fused cross-entropy ----------------
    @pl.when(phase == 1)
    def _compute_pass():
        scale = scale_sc[...]                     # (1, H) folded BN scale
        shift = shift_sc[...]                     # (1, H) folded BN shift
        if cache_in_vmem:
            x = cache_ref[t].astype(jnp.float32)  # (rows, H) from VMEM cache
        else:
            x = pooled_ref[...]                   # fallback: re-read from HBM

        y = x * scale + shift                     # BatchNorm1d (f32 VPU)
        # dropout(p=0.5) -> identity (eval mode; see TODO above)
        h = jnp.dot(y.astype(jnp.bfloat16), w0_ref[...],   # one merged MXU GEMM
                    preferred_element_type=jnp.float32)
        h = jnp.maximum(h + b0_ref[...], 0.0)     # bias + ReLU
        # dropout0(p=0.3) -> identity (eval mode; see TODO above)
        # Linear(768, 1) as VPU multiply + lane reduce (no 1-wide MXU output).
        z = jnp.sum(h * w1_ref[...], axis=-1, keepdims=True) + b1_ref[0]  # (rows, 1)
        zcol_ref[...] = z                         # raw logits column output

        # Fused CrossEntropyLoss (mean): the 3 class logits of example e sit at
        # rows 3e, 3e+1, 3e+2.  Shifted contiguous reads of a small VMEM scratch
        # align them onto the anchor row 3e (padding rows are zero + masked).
        z_sc[pl.ds(0, rows), :] = z
        za = z                                    # z[r]
        zb = z_sc[pl.ds(1, rows), :]              # z[r+1]
        zc = z_sc[pl.ds(2, rows), :]              # z[r+2]

        lab = labels_ref[...]                     # (rows, 1) int32
        row = lax.broadcasted_iota(jnp.int32, (rows, 1), 0)
        is_anchor = (row % NUM_CLASSES) == 0      # valid only at rows 3e

        m = jnp.maximum(jnp.maximum(za, zb), zc)
        lse = m + jnp.log(jnp.exp(za - m) + jnp.exp(zb - m) + jnp.exp(zc - m))
        picked = jnp.where(lab == 0, za, jnp.where(lab == 1, zb, zc))
        loss_sc[...] += jnp.sum(jnp.where(is_anchor, lse - picked, 0.0),
                                axis=0, keepdims=True)        # (1, 1)

        @pl.when(t == last_t)
        def _emit_loss():
            loss_ref[...] = loss_sc[...] * inv_groups


# ---------------------------------------------------------------------------
# Wrapper
# ---------------------------------------------------------------------------
@jax.jit
def conference_resolution_forward(pooled, gamma, beta, w0, b0, w1, b1, labels):
    """pooled: (B*3, 768) f32 'pooler_output'; labels: (B,) int32.
    Returns (output (B,3) f32, loss scalar f32) mirroring the module."""
    n, hdim = pooled.shape
    g = n // NUM_CLASSES

    w0_bf = w0.astype(jnp.bfloat16)            # no-op if caller pre-cast (recommended)
    w1_row = w1.reshape(1, hdim).astype(jnp.float32)   # lane-dense (1, 768) row
    b1_s = b1.reshape(1).astype(jnp.float32)           # SMEM scalar
    # Per-row label (tiny XLA op) so CE needs no in-kernel regrouping of labels.
    labels_row = jnp.repeat(labels.astype(jnp.int32), NUM_CLASSES).reshape(n, 1)

    gm = _pick_group_tile(g)
    rows_tile = NUM_CLASSES * gm
    num_t = g // gm
    grid = (2, num_t)                          # (phase: stats/compute, row tiles)

    # Full-batch bf16 activation cache in VMEM (skips the 2nd HBM pass of pooled)
    # whenever it fits the budget; otherwise phase 1 re-reads pooled from HBM.
    cache_in_vmem = (n * hdim * 2) <= _CACHE_CAP_BYTES
    if cache_in_vmem:
        pooled_map = lambda p, t: (t * (1 - p), 0)   # phase 1: stay on block 0 (no re-DMA)
        cache_shape = (num_t, rows_tile, hdim)
    else:
        pooled_map = lambda p, t: (t, 0)             # fallback: stream pooled again
        cache_shape = (1, 8, hdim)                   # unused dummy scratch

    inv_row_spec = pl.BlockSpec((1, hdim), lambda p, t: (0, 0))   # grid-invariant

    kernel = functools.partial(fused_head_loss_kernel,
                               inv_rows=1.0 / n, inv_groups=1.0 / g,
                               cache_in_vmem=cache_in_vmem)

    pooled_passes = 1 if cache_in_vmem else 2
    cost = pl.CostEstimate(
        flops=int(2 * n * hdim * hdim + 10 * n * hdim),
        transcendentals=int(3 * n + hdim),
        bytes_accessed=int(pooled_passes * n * hdim * 4 + hdim * hdim * 2
                           + 6 * hdim * 4 + n * 8 + 8),
    )

    zcol, loss = pl.pallas_call(
        kernel,
        grid=grid,
        in_specs=[
            pl.BlockSpec((rows_tile, hdim), pooled_map),                    # pooled (N,768)
            inv_row_spec,                                                   # gamma
            inv_row_spec,                                                   # beta
            pl.BlockSpec((hdim, hdim), lambda p, t: (0, 0)),                # W0 bf16 resident
            inv_row_spec,                                                   # b0
            inv_row_spec,                                                   # w1 row
            pl.BlockSpec(memory_space=pltpu.MemorySpace.SMEM),              # b1 scalar
            pl.BlockSpec((rows_tile, 1), lambda p, t: (t, 0)),              # per-row labels
        ],
        out_specs=[
            pl.BlockSpec((rows_tile, 1), lambda p, t: (t, 0)),              # logits column
            pl.BlockSpec((1, 1), lambda p, t: (0, 0)),                      # loss
        ],
        out_shape=[
            jax.ShapeDtypeStruct((n, 1), jnp.float32),
            jax.ShapeDtypeStruct((1, 1), jnp.float32),
        ],
        scratch_shapes=[
            pltpu.VMEM((1, hdim), jnp.float32),          # sum
            pltpu.VMEM((1, hdim), jnp.float32),          # sum of squares
            pltpu.VMEM((1, hdim), jnp.float32),          # folded BN scale
            pltpu.VMEM((1, hdim), jnp.float32),          # folded BN shift
            pltpu.VMEM((1, 1), jnp.float32),             # loss accumulator
            pltpu.VMEM((rows_tile + 8, 1), jnp.float32), # z column + shift padding
            pltpu.VMEM(cache_shape, jnp.bfloat16),       # bf16 activation cache
        ],
        compiler_params=pltpu.CompilerParams(
            # Both axes carry cross-step state (BN stats / loss / VMEM cache),
            # so they must stay "arbitrary" (see v7x TODO at the top).
            dimension_semantics=("arbitrary", "arbitrary"),
            vmem_limit_bytes=_vmem_limit_bytes(rows_tile, num_t, cache_in_vmem)),
        cost_estimate=cost,
    )(pooled, gamma, beta, w0_bf, b0, w1_row, b1_s, labels_row)

    # Rows are already e0c0, e0c1, e0c2, ... so this tiny XLA reshape is exactly
    # the logits.view(-1, 3) grouping of the reference module.
    return zcol.reshape(g, NUM_CLASSES), loss[0, 0]


# Pure-JAX (f32) reference for the numerical sanity check.
def _reference(pooled, gamma, beta, w0, b0, w1, b1, labels):
    mean = pooled.mean(0, keepdims=True)
    var = ((pooled - mean) ** 2).mean(0, keepdims=True)
    y = (pooled - mean) / jnp.sqrt(var + BN_EPS) * gamma + beta
    h = jnp.maximum(y @ w0 + b0, 0.0)
    logits = (h @ w1 + b1).reshape(-1, NUM_CLASSES)
    lse = jax.scipy.special.logsumexp(logits, axis=-1)
    picked = jnp.take_along_axis(logits, labels[:, None], axis=-1)[:, 0]
    return logits, jnp.mean(lse - picked)


if __name__ == "__main__":
    B = 2                      # examples; 3 candidate mentions each
    N = B * NUM_CLASSES        # flattened bert batch, as in bert_input.view(-1, l)
    H = HIDDEN

    key = jax.random.PRNGKey(0)
    k_pool, k_w0, k_w1, k_lab = jax.random.split(key, 4)

    # Synthetic pooler_output standing in for the BERT encoder.
    pooled = jax.random.normal(k_pool, (N, H), dtype=jnp.float32)

    # Deterministic parameter init (BatchNorm default: gamma=1, beta=0).
    gamma = jnp.ones((1, H), dtype=jnp.float32)
    beta = jnp.zeros((1, H), dtype=jnp.float32)
    w0 = jax.random.normal(k_w0, (H, H), dtype=jnp.float32) * 0.02   # (in, out)
    b0 = jnp.zeros((1, H), dtype=jnp.float32)
    w1 = jax.random.normal(k_w1, (H, 1), dtype=jnp.float32) * 0.02   # (in, out)
    b1 = jnp.zeros((1, 1), dtype=jnp.float32)

    labels = jax.random.randint(k_lab, (B,), 0, NUM_CLASSES, dtype=jnp.int32)

    # Pre-cast W0 to bf16 once, outside the jitted wrapper (review item 8).
    w0_bf = w0.astype(jnp.bfloat16)

    output, loss = conference_resolution_forward(
        pooled, gamma, beta, w0_bf, b0, w1, b1, labels)
    output = jax.block_until_ready(output)
    loss = jax.block_until_ready(loss)

    ref_out, ref_loss = _reference(pooled, gamma, beta, w0, b0, w1, b1, labels)
    # Tolerance absorbs the bf16 MXU GEMM and the bf16 VMEM activation cache.
    np.testing.assert_allclose(np.asarray(output), np.asarray(ref_out),
                               rtol=1e-2, atol=1e-2)
    np.testing.assert_allclose(float(loss), float(ref_loss),
                               rtol=1e-2, atol=1e-2)

    print("KERNEL_OK")
</pallas_src>

<mosaic_0001>
module attributes {stable_mosaic.version = 11 : i64} {
  func.func @fused_head_loss_kernel(%arg0: i32, %arg1: i32, %arg2: memref<6x768xf32, #tpu.memory_space<vmem>>, %arg3: memref<1x768xf32, #tpu.memory_space<vmem>>, %arg4: memref<1x768xf32, #tpu.memory_space<vmem>>, %arg5: memref<768x768xbf16, #tpu.memory_space<vmem>>, %arg6: memref<1x768xf32, #tpu.memory_space<vmem>>, %arg7: memref<1x768xf32, #tpu.memory_space<vmem>>, %arg8: memref<1xf32, #tpu.memory_space<smem>>, %arg9: memref<6x1xi32, #tpu.memory_space<vmem>>, %arg10: memref<6x1xf32, #tpu.memory_space<vmem>>, %arg11: memref<1x1xf32, #tpu.memory_space<vmem>>, %arg12: memref<1x768xf32, #tpu.memory_space<vmem>>, %arg13: memref<1x768xf32, #tpu.memory_space<vmem>>, %arg14: memref<1x768xf32, #tpu.memory_space<vmem>>, %arg15: memref<1x768xf32, #tpu.memory_space<vmem>>, %arg16: memref<1x1xf32, #tpu.memory_space<vmem>>, %arg17: memref<14x1xf32, #tpu.memory_space<vmem>>, %arg18: memref<1x6x768xbf16, #tpu.memory_space<vmem>>) attributes {dimension_semantics = [#tpu.dimension_semantics<arbitrary>, #tpu.dimension_semantics<arbitrary>], iteration_bounds = array<i64: 2, 1>, scalar_prefetch = 0 : i64, scratch_operands = 7 : i64, tpu.core_type = #tpu.core_type<tc>, window_params = [{transform_indices = @transform_0, window_bounds = array<i64: 6, 768>}, {pipeline_mode = #tpu.pipeline_mode<synchronous>, transform_indices = @transform_1, window_bounds = array<i64: 1, 768>}, {pipeline_mode = #tpu.pipeline_mode<synchronous>, transform_indices = @transform_2, window_bounds = array<i64: 1, 768>}, {pipeline_mode = #tpu.pipeline_mode<synchronous>, transform_indices = @transform_3, window_bounds = array<i64: 768, 768>}, {pipeline_mode = #tpu.pipeline_mode<synchronous>, transform_indices = @transform_4, window_bounds = array<i64: 1, 768>}, {pipeline_mode = #tpu.pipeline_mode<synchronous>, transform_indices = @transform_5, window_bounds = array<i64: 1, 768>}, {transform_indices = @transform_6, window_bounds = array<i64: 1>}, {transform_indices = @transform_7, window_bounds = array<i64: 6, 1>}, {transform_indices = @transform_8, window_bounds = array<i64: 6, 1>}, {pipeline_mode = #tpu.pipeline_mode<synchronous>, transform_indices = @transform_9, window_bounds = array<i64: 1, 1>}]} {
    %c0_i32 = arith.constant 0 : i32
    %0 = arith.cmpi eq, %arg0, %c0_i32 : i32
    %1 = arith.extui %0 : i1 to i32
    %c0_i32_0 = arith.constant 0 : i32
    %2 = arith.cmpi ne, %1, %c0_i32_0 : i32
    scf.if %2 {
      %c0_i32_2 = arith.constant 0 : i32
      %6 = arith.cmpi eq, %arg1, %c0_i32_2 : i32
      %7 = arith.extui %6 : i1 to i32
      %c0_i32_3 = arith.constant 0 : i32
      %8 = arith.cmpi ne, %7, %c0_i32_3 : i32
      scf.if %8 {
        %cst_18 = arith.constant 0.000000e+00 : f32
        %29 = vector.broadcast %cst_18 : f32 to vector<1x768xf32>
        %c0_19 = arith.constant 0 : index
        %c0_20 = arith.constant 0 : index
        %30 = vector.load %arg12[%c0_19, %c0_20] : memref<1x768xf32, #tpu.memory_space<vmem>>, vector<1x768xf32>
        tpu.vector_store %arg12[%c0_19, %c0_20], %29 {strides = array<i32>} : memref<1x768xf32, #tpu.memory_space<vmem>>, vector<1x768xf32>,
        %cst_21 = arith.constant 0.000000e+00 : f32
        %31 = vector.broadcast %cst_21 : f32 to vector<1x768xf32>
        %c0_22 = arith.constant 0 : index
        %c0_23 = arith.constant 0 : index
        %32 = vector.load %arg13[%c0_22, %c0_23] : memref<1x768xf32, #tpu.memory_space<vmem>>, vector<1x768xf32>
        tpu.vector_store %arg13[%c0_22, %c0_23], %31 {strides = array<i32>} : memref<1x768xf32, #tpu.memory_space<vmem>>, vector<1x768xf32>,
        %cst_24 = arith.constant 0.000000e+00 : f32
        %33 = vector.broadcast %cst_24 : f32 to vector<1x1xf32>
        %c0_25 = arith.constant 0 : index
        %c0_26 = arith.constant 0 : index
        %34 = vector.load %arg16[%c0_25, %c0_26] : memref<1x1xf32, #tpu.memory_space<vmem>>, vector<1x1xf32>
        tpu.vector_store %arg16[%c0_25, %c0_26], %33 {strides = array<i32>} : memref<1x1xf32, #tpu.memory_space<vmem>>, vector<1x1xf32>,
        %cst_27 = arith.constant 0.000000e+00 : f32
        %35 = vector.broadcast %cst_27 : f32 to vector<14x1xf32>
        %c0_28 = arith.constant 0 : index
        %c0_29 = arith.constant 0 : index
        %36 = vector.load %arg17[%c0_28, %c0_29] : memref<14x1xf32, #tpu.memory_space<vmem>>, vector<14x1xf32>
        tpu.vector_store %arg17[%c0_28, %c0_29], %35 {strides = array<i32>} : memref<14x1xf32, #tpu.memory_space<vmem>>, vector<14x1xf32>,
      } else {
      }
      %c0 = arith.constant 0 : index
      %c0_4 = arith.constant 0 : index
      %9 = vector.load %arg2[%c0, %c0_4] : memref<6x768xf32, #tpu.memory_space<vmem>>, vector<6x768xf32>
      %c0_5 = arith.constant 0 : index
      %c0_6 = arith.constant 0 : index
      %10 = vector.load %arg12[%c0_5, %c0_6] : memref<1x768xf32, #tpu.memory_space<vmem>>, vector<1x768xf32>
      %cst = arith.constant dense<0.000000e+00> : vector<768xf32>
      %11 = vector.multi_reduction <add>, %9, %cst [0] : vector<6x768xf32> to vector<768xf32>
      %12 = vector.shape_cast %11 : vector<768xf32> to vector<1x768xf32>
      %13 = arith.addf %10, %12 : vector<1x768xf32>
      %c0_7 = arith.constant 0 : index
      %c0_8 = arith.constant 0 : index
      %14 = vector.load %arg12[%c0_7, %c0_8] : memref<1x768xf32, #tpu.memory_space<vmem>>, vector<1x768xf32>
      tpu.vector_store %arg12[%c0_7, %c0_8], %13 {strides = array<i32>} : memref<1x768xf32, #tpu.memory_space<vmem>>, vector<1x768xf32>,
      %c0_9 = arith.constant 0 : index
      %c0_10 = arith.constant 0 : index
      %15 = vector.load %arg13[%c0_9, %c0_10] : memref<1x768xf32, #tpu.memory_space<vmem>>, vector<1x768xf32>
      %16 = arith.mulf %9, %9 : vector<6x768xf32>
      %cst_11 = arith.constant dense<0.000000e+00> : vector<768xf32>
      %17 = vector.multi_reduction <add>, %16, %cst_11 [0] : vector<6x768xf32> to vector<768xf32>
      %18 = vector.shape_cast %17 : vector<768xf32> to vector<1x768xf32>
      %19 = arith.addf %15, %18 : vector<1x768xf32>
      %c0_12 = arith.constant 0 : index
      %c0_13 = arith.constant 0 : index
      %20 = vector.load %arg13[%c0_12, %c0_13] : memref<1x768xf32, #tpu.memory_space<vmem>>, vector<1x768xf32>
      tpu.vector_store %arg13[%c0_12, %c0_13], %19 {strides = array<i32>} : memref<1x768xf32, #tpu.memory_space<vmem>>, vector<1x768xf32>,
      %21 = arith.truncf %9 : vector<6x768xf32> to vector<6x768xbf16>
      %22 = arith.index_cast %arg1 : i32 to index
      %c0_14 = arith.constant 0 : index
      %c0_15 = arith.constant 0 : index
      %23 = vector.load %arg18[%22, %c0_14, %c0_15] : memref<1x6x768xbf16, #tpu.memory_space<vmem>>, vector<1x6x768xbf16>
      %24 = vector.shape_cast %23 : vector<1x6x768xbf16> to vector<6x768xbf16>
      %25 = vector.shape_cast %21 : vector<6x768xbf16> to vector<1x6x768xbf16>
      tpu.vector_store %arg18[%22, %c0_14, %c0_15], %25 {strides = array<i32>} : memref<1x6x768xbf16, #tpu.memory_space<vmem>>, vector<1x6x768xbf16>,
      %c0_i32_16 = arith.constant 0 : i32
      %26 = arith.cmpi eq, %arg1, %c0_i32_16 : i32
      %27 = arith.extui %26 : i1 to i32
      %c0_i32_17 = arith.constant 0 : i32
      %28 = arith.cmpi ne, %27, %c0_i32_17 : i32
      scf.if %28 {
        %c0_18 = arith.constant 0 : index
        %c0_19 = arith.constant 0 : index
        %29 = vector.load %arg12[%c0_18, %c0_19] : memref<1x768xf32, #tpu.memory_space<vmem>>, vector<1x768xf32>
        %cst_20 = arith.constant 0.166666672 : f32
        %30 = vector.broadcast %cst_20 : f32 to vector<1x768xf32>
        %31 = arith.mulf %29, %30 : vector<1x768xf32>
        %c0_21 = arith.constant 0 : index
        %c0_22 = arith.constant 0 : index
        %32 = vector.load %arg13[%c0_21, %c0_22] : memref<1x768xf32, #tpu.memory_space<vmem>>, vector<1x768xf32>
        %cst_23 = arith.constant 0.166666672 : f32
        %33 = vector.broadcast %cst_23 : f32 to vector<1x768xf32>
        %34 = arith.mulf %32, %33 : vector<1x768xf32>
        %35 = arith.mulf %31, %31 : vector<1x768xf32>
        %36 = arith.subf %34, %35 : vector<1x768xf32>
        %cst_24 = arith.constant 9.99999974E-6 : f32
        %37 = vector.broadcast %cst_24 : f32 to vector<1x768xf32>
        %38 = arith.addf %36, %37 : vector<1x768xf32>
        %39 = math.rsqrt %38 : vector<1x768xf32>
        %c0_25 = arith.constant 0 : index
        %c0_26 = arith.constant 0 : index
        %40 = vector.load %arg3[%c0_25, %c0_26] : memref<1x768xf32, #tpu.memory_space<vmem>>, vector<1x768xf32>
        %41 = arith.mulf %40, %39 : vector<1x768xf32>
        %c0_27 = arith.constant 0 : index
        %c0_28 = arith.constant 0 : index
        %42 = vector.load %arg14[%c0_27, %c0_28] : memref<1x768xf32, #tpu.memory_space<vmem>>, vector<1x768xf32>
        tpu.vector_store %arg14[%c0_27, %c0_28], %41 {strides = array<i32>} : memref<1x768xf32, #tpu.memory_space<vmem>>, vector<1x768xf32>,
        %c0_29 = arith.constant 0 : index
        %c0_30 = arith.constant 0 : index
        %43 = vector.load %arg4[%c0_29, %c0_30] : memref<1x768xf32, #tpu.memory_space<vmem>>, vector<1x768xf32>
        %44 = arith.mulf %31, %41 : vector<1x768xf32>
        %45 = arith.subf %43, %44 : vector<1x768xf32>
        %c0_31 = arith.constant 0 : index
        %c0_32 = arith.constant 0 : index
        %46 = vector.load %arg15[%c0_31, %c0_32] : memref<1x768xf32, #tpu.memory_space<vmem>>, vector<1x768xf32>
        tpu.vector_store %arg15[%c0_31, %c0_32], %45 {strides = array<i32>} : memref<1x768xf32, #tpu.memory_space<vmem>>, vector<1x768xf32>,
      } else {
      }
    } else {
    }
    %c1_i32 = arith.constant 1 : i32
    %3 = arith.cmpi eq, %arg0, %c1_i32 : i32
    %4 = arith.extui %3 : i1 to i32
    %c0_i32_1 = arith.constant 0 : i32
    %5 = arith.cmpi ne, %4, %c0_i32_1 : i32
    scf.if %5 {
      %c0 = arith.constant 0 : index
      %c0_2 = arith.constant 0 : index
      %6 = vector.load %arg14[%c0, %c0_2] : memref<1x768xf32, #tpu.memory_space<vmem>>, vector<1x768xf32>
      %c0_3 = arith.constant 0 : index
      %c0_4 = arith.constant 0 : index
      %7 = vector.load %arg15[%c0_3, %c0_4] : memref<1x768xf32, #tpu.memory_space<vmem>>, vector<1x768xf32>
      %8 = arith.index_cast %arg1 : i32 to index
      %c0_5 = arith.constant 0 : index
      %c0_6 = arith.constant 0 : index
      %9 = vector.load %arg18[%8, %c0_5, %c0_6] : memref<1x6x768xbf16, #tpu.memory_space<vmem>>, vector<1x6x768xbf16>
      %10 = vector.shape_cast %9 : vector<1x6x768xbf16> to vector<6x768xbf16>
      %11 = arith.extf %10 : vector<6x768xbf16> to vector<6x768xf32>
      %12 = vector.broadcast %6 : vector<1x768xf32> to vector<6x768xf32>
      %13 = arith.mulf %11, %12 : vector<6x768xf32>
      %14 = vector.broadcast %7 : vector<1x768xf32> to vector<6x768xf32>
      %15 = arith.addf %13, %14 : vector<6x768xf32>
      %16 = arith.truncf %15 : vector<6x768xf32> to vector<6x768xbf16>
      %c0_7 = arith.constant 0 : index
      %c0_8 = arith.constant 0 : index
      %17 = vector.load %arg5[%c0_7, %c0_8] : memref<768x768xbf16, #tpu.memory_space<vmem>>, vector<768x768xbf16>
      %cst = arith.constant dense<0.000000e+00> : vector<6x768xf32>
      %18 = tpu.matmul %16, %17, %cst {dimension_numbers = #tpu.dot_dimension_numbers<[1], [0], [0], [1], [0, 0, 1, 1], [], []>} : vector<6x768xbf16>, vector<768x768xbf16>, vector<6x768xf32> -> vector<6x768xf32>
      %c0_9 = arith.constant 0 : index
      %c0_10 = arith.constant 0 : index
      %19 = vector.load %arg6[%c0_9, %c0_10] : memref<1x768xf32, #tpu.memory_space<vmem>>, vector<1x768xf32>
      %20 = vector.broadcast %19 : vector<1x768xf32> to vector<6x768xf32>
      %21 = arith.addf %18, %20 : vector<6x768xf32>
      %cst_11 = arith.constant 0.000000e+00 : f32
      %22 = vector.broadcast %cst_11 : f32 to vector<6x768xf32>
      %23 = arith.maximumf %21, %22 : vector<6x768xf32>
      %c0_12 = arith.constant 0 : index
      %c0_13 = arith.constant 0 : index
      %24 = vector.load %arg7[%c0_12, %c0_13] : memref<1x768xf32, #tpu.memory_space<vmem>>, vector<1x768xf32>
      %25 = vector.broadcast %24 : vector<1x768xf32> to vector<6x768xf32>
      %26 = arith.mulf %23, %25 : vector<6x768xf32>
      %cst_14 = arith.constant dense<0.000000e+00> : vector<6xf32>
      %27 = vector.multi_reduction <add>, %26, %cst_14 [1] : vector<6x768xf32> to vector<6xf32>
      %28 = vector.shape_cast %27 : vector<6xf32> to vector<6x1xf32>
      %c0_15 = arith.constant 0 : index
      %29 = memref.load %arg8[%c0_15] : memref<1xf32, #tpu.memory_space<smem>>
      %30 = vector.broadcast %29 : f32 to vector<6x1xf32>
      %31 = arith.addf %28, %30 : vector<6x1xf32>
      %c0_16 = arith.constant 0 : index
      %c0_17 = arith.constant 0 : index
      %32 = vector.load %arg10[%c0_16, %c0_17] : memref<6x1xf32, #tpu.memory_space<vmem>>, vector<6x1xf32>
      tpu.vector_store %arg10[%c0_16, %c0_17], %31 {strides = array<i32>} : memref<6x1xf32, #tpu.memory_space<vmem>>, vector<6x1xf32>,
      %c0_18 = arith.constant 0 : index
      %c0_19 = arith.constant 0 : index
      %33 = vector.load %arg17[%c0_18, %c0_19] : memref<14x1xf32, #tpu.memory_space<vmem>>, vector<6x1xf32>
      tpu.vector_store %arg17[%c0_18, %c0_19], %31 {strides = array<i32>} : memref<14x1xf32, #tpu.memory_space<vmem>>, vector<6x1xf32>,
      %c1 = arith.constant 1 : index
      %c0_20 = arith.constant 0 : index
      %34 = vector.load %arg17[%c1, %c0_20] : memref<14x1xf32, #tpu.memory_space<vmem>>, vector<6x1xf32>
      %c2 = arith.constant 2 : index
      %c0_21 = arith.constant 0 : index
      %35 = vector.load %arg17[%c2, %c0_21] : memref<14x1xf32, #tpu.memory_space<vmem>>, vector<6x1xf32>
      %c0_22 = arith.constant 0 : index
      %c0_23 = arith.constant 0 : index
      %36 = vector.load %arg9[%c0_22, %c0_23] : memref<6x1xi32, #tpu.memory_space<vmem>>, vector<6x1xi32>
      %37 = tpu.iota {dimensions = array<i32: 0>} : vector<6x1xi32>
      %c3_i32 = arith.constant 3 : i32
      %c0_i32_24 = arith.constant 0 : i32
      %38 = arith.cmpi eq, %c3_i32, %c0_i32_24 : i32
      %c1_i32_25 = arith.constant 1 : i32
      %39 = arith.select %38, %c1_i32_25, %c3_i32 : i32
      %40 = vector.broadcast %39 : i32 to vector<6x1xi32>
      %41 = arith.remsi %37, %40 : vector<6x1xi32>
      %c0_i32_26 = arith.constant 0 : i32
      %42 = vector.broadcast %c0_i32_26 : i32 to vector<6x1xi32>
      %43 = arith.cmpi ne, %41, %42 : vector<6x1xi32>
      %c0_i32_27 = arith.constant 0 : i32
      %44 = vector.broadcast %c0_i32_27 : i32 to vector<6x1xi32>
      %45 = arith.cmpi slt, %41, %44 : vector<6x1xi32>
      %c0_i32_28 = arith.constant 0 : i32
      %46 = arith.cmpi slt, %39, %c0_i32_28 : i32
      %47 = vector.broadcast %46 : i1 to vector<6x1xi1>
      %48 = vector.broadcast %47 : vector<6x1xi1> to vector<6x1xi1>
      %49 = arith.xori %45, %48 : vector<6x1xi1>
      %50 = arith.andi %49, %43 : vector<6x1xi1>
      %51 = vector.broadcast %39 : i32 to vector<6x1xi32>
      %52 = arith.addi %41, %51 : vector<6x1xi32>
      %53 = arith.select %50, %52, %41 : vector<6x1xi1>, vector<6x1xi32>
      %c0_i32_29 = arith.constant 0 : i32
      %54 = vector.broadcast %c0_i32_29 : i32 to vector<6x1xi32>
      %55 = arith.cmpi eq, %53, %54 : vector<6x1xi32>
      %56 = arith.maximumf %31, %34 : vector<6x1xf32>
      %57 = arith.maximumf %56, %35 : vector<6x1xf32>
      %58 = arith.subf %31, %57 : vector<6x1xf32>
      %59 = math.exp %58 : vector<6x1xf32>
      %60 = arith.subf %34, %57 : vector<6x1xf32>
      %61 = math.exp %60 : vector<6x1xf32>
      %62 = arith.addf %59, %61 : vector<6x1xf32>
      %63 = arith.subf %35, %57 : vector<6x1xf32>
      %64 = math.exp %63 : vector<6x1xf32>
      %65 = arith.addf %62, %64 : vector<6x1xf32>
      %66 = math.log %65 : vector<6x1xf32>
      %67 = arith.addf %57, %66 : vector<6x1xf32>
      %c0_i32_30 = arith.constant 0 : i32
      %68 = vector.broadcast %c0_i32_30 : i32 to vector<6x1xi32>
      %69 = arith.cmpi eq, %36, %68 : vector<6x1xi32>
      %c1_i32_31 = arith.constant 1 : i32
      %70 = vector.broadcast %c1_i32_31 : i32 to vector<6x1xi32>
      %71 = arith.cmpi eq, %36, %70 : vector<6x1xi32>
      %72 = arith.select %71, %34, %35 : vector<6x1xi1>, vector<6x1xf32>
      %73 = arith.select %69, %31, %72 : vector<6x1xi1>, vector<6x1xf32>
      %c0_32 = arith.constant 0 : index
      %c0_33 = arith.constant 0 : index
      %74 = vector.load %arg16[%c0_32, %c0_33] : memref<1x1xf32, #tpu.memory_space<vmem>>, vector<1x1xf32>
      %75 = arith.subf %67, %73 : vector<6x1xf32>
      %cst_34 = arith.constant 0.000000e+00 : f32
      %76 = vector.broadcast %cst_34 : f32 to vector<6x1xf32>
      %77 = arith.select %55, %75, %76 : vector<6x1xi1>, vector<6x1xf32>
      %cst_35 = arith.constant dense<0.000000e+00> : vector<1xf32>
      %78 = vector.multi_reduction <add>, %77, %cst_35 [0] : vector<6x1xf32> to vector<1xf32>
      %79 = vector.shape_cast %78 : vector<1xf32> to vector<1x1xf32>
      %80 = arith.addf %74, %79 : vector<1x1xf32>
      %c0_36 = arith.constant 0 : index
      %c0_37 = arith.constant 0 : index
      %81 = vector.load %arg16[%c0_36, %c0_37] : memref<1x1xf32, #tpu.memory_space<vmem>>, vector<1x1xf32>
      tpu.vector_store %arg16[%c0_36, %c0_37], %80 {strides = array<i32>} : memref<1x1xf32, #tpu.memory_space<vmem>>, vector<1x1xf32>,
      %c0_i32_38 = arith.constant 0 : i32
      %82 = arith.cmpi eq, %arg1, %c0_i32_38 : i32
      %83 = arith.extui %82 : i1 to i32
      %c0_i32_39 = arith.constant 0 : i32
      %84 = arith.cmpi ne, %83, %c0_i32_39 : i32
      scf.if %84 {
        %c0_40 = arith.constant 0 : index
        %c0_41 = arith.constant 0 : index
        %85 = vector.load %arg16[%c0_40, %c0_41] : memref<1x1xf32, #tpu.memory_space<vmem>>, vector<1x1xf32>
        %cst_42 = arith.constant 5.000000e-01 : f32
        %86 = vector.broadcast %cst_42 : f32 to vector<1x1xf32>
        %87 = arith.mulf %85, %86 : vector<1x1xf32>
        %c0_43 = arith.constant 0 : index
        %c0_44 = arith.constant 0 : index
        %88 = vector.load %arg11[%c0_43, %c0_44] : memref<1x1xf32, #tpu.memory_space<vmem>>, vector<1x1xf32>
        tpu.vector_store %arg11[%c0_43, %c0_44], %87 {strides = array<i32>} : memref<1x1xf32, #tpu.memory_space<vmem>>, vector<1x1xf32>,
      } else {
      }
    } else {
    }
    return
  }
  func.func @transform_0(%arg0: i32, %arg1: i32) -> (i32, i32) {
    %c1_i32 = arith.constant 1 : i32
    %0 = arith.subi %c1_i32, %arg0 : i32
    %1 = arith.muli %arg1, %0 : i32
    %c0_i32 = arith.constant 0 : i32
    %c0_i32_0 = arith.constant 0 : i32
    return %1, %c0_i32 : i32, i32
  }
  func.func @transform_1(%arg0: i32, %arg1: i32) -> (i32, i32) {
    %c0_i32 = arith.constant 0 : i32
    %c0_i32_0 = arith.constant 0 : i32
    %c0_i32_1 = arith.constant 0 : i32
    return %c0_i32, %c0_i32_0 : i32, i32
  }
  func.func @transform_2(%arg0: i32, %arg1: i32) -> (i32, i32) {
    %c0_i32 = arith.constant 0 : i32
    %c0_i32_0 = arith.constant 0 : i32
    %c0_i32_1 = arith.constant 0 : i32
    return %c0_i32, %c0_i32_0 : i32, i32
  }
  func.func @transform_3(%arg0: i32, %arg1: i32) -> (i32, i32) {
    %c0_i32 = arith.constant 0 : i32
    %c0_i32_0 = arith.constant 0 : i32
    %c0_i32_1 = arith.constant 0 : i32
    return %c0_i32, %c0_i32_0 : i32, i32
  }
  func.func @transform_4(%arg0: i32, %arg1: i32) -> (i32, i32) {
    %c0_i32 = arith.constant 0 : i32
    %c0_i32_0 = arith.constant 0 : i32
    %c0_i32_1 = arith.constant 0 : i32
    return %c0_i32, %c0_i32_0 : i32, i32
  }
  func.func @transform_5(%arg0: i32, %arg1: i32) -> (i32, i32) {
    %c0_i32 = arith.constant 0 : i32
    %c0_i32_0 = arith.constant 0 : i32
    %c0_i32_1 = arith.constant 0 : i32
    return %c0_i32, %c0_i32_0 : i32, i32
  }
  func.func @transform_6(%arg0: i32, %arg1: i32) -> i32 {
    %c0_i32 = arith.constant 0 : i32
    %c0_i32_0 = arith.constant 0 : i32
    return %c0_i32 : i32
  }
  func.func @transform_7(%arg0: i32, %arg1: i32) -> (i32, i32) {
    %c0_i32 = arith.constant 0 : i32
    %c0_i32_0 = arith.constant 0 : i32
    return %arg1, %c0_i32 : i32, i32
  }
  func.func @transform_8(%arg0: i32, %arg1: i32) -> (i32, i32) {
    %c0_i32 = arith.constant 0 : i32
    %c0_i32_0 = arith.constant 0 : i32
    return %arg1, %c0_i32 : i32, i32
  }
  func.func @transform_9(%arg0: i32, %arg1: i32) -> (i32, i32) {
    %c0_i32 = arith.constant 0 : i32
    %c0_i32_0 = arith.constant 0 : i32
    %c0_i32_1 = arith.constant 0 : i32
    return %c0_i32, %c0_i32_0 : i32, i32
  }
}

</mosaic_0001>

<bundles_post_ra>
// kernel: conference_resolution_forward.1
= control target key start
LH: loop header
LB: loop body
LE: loop exit
PB: predicated region body
PF: predicated region fallthrough
CT: control target
= control target key end

     0   :  { %s4844_s0 = inlined_call_operand.hbm [shape: f32[6,768], index: 0, kind: input, shape index: {}]   ;;  %s4845_s1 = inlined_call_operand.hbm [shape: f32[1,768], index: 1, kind: input, shape index: {}]   ;;  %s4846_s2 = inlined_call_operand.hbm [shape: f32[1,768], index: 2, kind: input, shape index: {}]   ;;  %s4847_s3 = inlined_call_operand.hbm [shape: bf16[768,768], index: 3, kind: input, shape index: {}]   ;;  %s4848_s4 = inlined_call_operand.hbm [shape: f32[1,768], index: 4, kind: input, shape index: {}]   ;;  %s4849_s5 = inlined_call_operand.hbm [shape: f32[1,768], index: 5, kind: input, shape index: {}]   ;;  %s4850_s6 = inlined_call_operand.<no memory space> [shape: f32[1], index: 6, kind: input, shape index: {}]   ;;  %s4851_s7 = inlined_call_operand.vmem [shape: s32[6,1], index: 7, kind: input, shape index: {}]   ;;  %s4852_s8 = inlined_call_operand.vmem [shape: f32[6,1], index: 8, kind: output, shape index: {0}]   ;;  %s4853_s9 = inlined_call_operand.hbm [shape: f32[1,1], index: 9, kind: output, shape index: {1}]  }
   0x1   :  { %4858 = sst [smem:[#allocation28_spill]] %s4845_s1 }
   0x2   :  { %15 = sst [smem:[#allocation9]] %s4850_s6 }
   0x3   :  { %16 = vsyncpa [#allocation11], 0 }
   0x4   :  { %18 = vsyncpa [#allocation11 + $0x1], 0 }
   0x5   :  { %19 = vsyncpa [#allocation14], 0 }
   0x6   :  { %20 = vsyncpa [#allocation17], 0 }
   0x7   :  { %21 = vsyncpa [#allocation20], 0 }
   0x8   :  { %22 = vsyncpa [#allocation12], 0  ;;  %s4424_s11 = smov 0   ;;  %s4426_s12 = smov 0  }
   0x9   :  { %s4428_s13 = smov 0  }
   0xa LB: > { %s4857_s6 = sadd.s32 4294967295, %s4358_s13   ;;  %s40_s14 = sadd.s32 1, %s4354_s12  ;;  %s4358_s13 = sphi %s4428_s13, %s28_s13   ;;  %s4354_s12 = sphi %s4426_s12, %s4876_s12   ;;  %s4350_s11 = sphi %s4424_s11, %s4875_s11  }
   0xb   : > { %p42_p0 = scmp.ge.s32.totalorder %s40_s14, 2  ;;  %p3235_p1 = scmp.ge.s32.totalorder %s4358_s13, 1 }
   0xc   : > { %p274_p2 = scmp.lt.s32.totalorder %s4358_s13, 3  ;;  %p4451_p4 = scmp.eq.s32.totalorder %s4857_s6, 0 }
   0xd   : > { %s4878_s14 = smov (%p42_p0, %s40_s14), 0  ;;  %s4360_s17 = smov [#allocation13]  }
   0xe   : > { %4859 = sst [smem:[#allocation27_spill]] %s4878_s14  ;;  %p4445_p3 = pnand %p3235_p1, %p274_p2 }
   0xf   : > { %s4861_s16 = scalar_select %p4451_p4, 1, 0 }
  0x10   : > { %s4860_s15 = scalar_select %p4445_p3, 1, 0 }
  0x11   : > { %p3610_p5 = pneg %p4445_p3  ;;  %s287_s18 = sshll.u32 %s4360_s17, 4  ;;  %s288_s18 = int_to_ptr.vmem [resolvable:$true] %s287_s18 }
  0x12   : > { %s4361_s20 = smov [#allocation16]   ;;  %s4863_s1 = sld [smem:[#allocation28_spill]] }
  0x13   : > { %p4459_p6 = pnand %p4451_p4, %p3610_p5  ;;  %s308_s21 = sshll.u32 %s4361_s20, 4  ;;  %s4463_s21 = int_to_ptr.vmem [resolvable:$true] %s308_s21 }
  0x15   : > { %p4473_p8 = pneg %p4459_p6 }
  0x18   : > { %s4122_s24 = scalar_lea.hbm %s4863_s1, 96 }
  0x19   : > { %p4123_p7 = scmp.ne.s32.totalorder %s4863_s1, %s4122_s24  ;;  %p4129_p11 = scmp.lt.u32.totalorder %s4122_s24, %s4863_s1 }
  0x1b   : > { %p4125_p9 = pnand %p4473_p8, %p4123_p7 }
  0x1d   : > { %p4126_p10 = pneg %p4125_p9 }
  0x1f   : > { %p4131_p12 = pnand %p4129_p11, %p4126_p10 }
  0x21   : > { %4134 = shalt.err (!%p4131_p12)
}
  0x22   : > { %s4135_s30 = scalar_lea.vmem %s288_s18, 96  ;;  %p4143_p2 = scmp.lt.s32.totalorder %s288_s18, %s288_s18 }
  0x23   : > { %p4136_p13 = scmp.ne.s32.totalorder %s288_s18, %s4135_s30  ;;  %p4144_p5 = scmp.lt.s32.totalorder %s4135_s30, %s4135_s30 }
  0x25   : > { %p4138_p0 = pnand %p4136_p13, %p4473_p8  ;;  %p4145_p4 = por %p4144_p5, %p4143_p2 }
  0x27   : > { %p4139_p1 = pneg %p4138_p0 }
  0x29   : > { %p4146_p3 = pnand %p4145_p4, %p4139_p1 }
  0x2b   : > { %4149 = shalt.err (!%p4146_p3)
}
  0x2c   : > { %3613 = dma.hbm_to_vmem [thread:$0]  (!%p4459_p6), %s4863_s1, 96, %s288_s18, [#allocation14]  }
  0x2d   : > { %s4150_s23 = scalar_lea.hbm %s4847_s3, 36864 }
  0x2e   : > { %p4151_p7 = scmp.ne.s32.totalorder %s4847_s3, %s4150_s23  ;;  %p4157_p3 = scmp.lt.u32.totalorder %s4150_s23, %s4847_s3 }
  0x30   : > { %p4153_p9 = pnand %p4151_p7, %p4473_p8 }
  0x32   : > { %p4154_p10 = pneg %p4153_p9 }
  0x34   : > { %p4159_p4 = pnand %p4157_p3, %p4154_p10 }
  0x36   : > { %4162 = shalt.err (!%p4159_p4)
}
  0x37   : > { %s4163_s18 = scalar_lea.vmem %s4463_s21, 36864  ;;  %p4171_p0 = scmp.lt.s32.totalorder %s4463_s21, %s4463_s21 }
  0x38   : > { %p4164_p11 = scmp.ne.s32.totalorder %s4463_s21, %s4163_s18  ;;  %p4172_p1 = scmp.lt.s32.totalorder %s4163_s18, %s4163_s18 }
  0x3a   : > { %p4166_p12 = pnand %p4164_p11, %p4473_p8  ;;  %p4173_p2 = por %p4172_p1, %p4171_p0 }
  0x3c   : > { %p4167_p13 = pneg %p4166_p12 }
  0x3e   : > { %p4174_p5 = pnand %p4173_p2, %p4167_p13 }
  0x40   : > { %4177 = shalt.err (!%p4174_p5)
}
  0x41   : > { %s4362_s29 = smov 384   ;;  %s4363_s30 = smov 24  }
  0x42   : > { %3619 = dma.hbm_to_vmem [thread:$0]  (!%p4459_p6), %s4847_s3, 36864, %s4463_s21, [#allocation17], %s4362_s29, %s4362_s29, %s4363_s30  }
  0x43   : > { %s4364_s20 = smov [#allocation15]   ;;  %s4365_s23 = smov [#allocation18]  }
  0x44   : > { %s298_s22 = sshll.u32 %s4364_s20, 4  ;;  %s322_s24 = sshll.u32 %s4365_s23, 4  ;;  %s299_s22 = int_to_ptr.vmem [resolvable:$true] %s298_s22  ;;  %s323_s24 = int_to_ptr.vmem [resolvable:$true] %s322_s24 }
  0x45   : > { %s4178_s28 = scalar_lea.hbm %s4846_s2, 96 }
  0x46   : > { %p4179_p7 = scmp.ne.s32.totalorder %s4846_s2, %s4178_s28  ;;  %p4185_p3 = scmp.lt.u32.totalorder %s4178_s28, %s4846_s2 }
  0x48   : > { %p4181_p9 = pnand %p4179_p7, %p4473_p8 }
  0x4a   : > { %p4182_p10 = pneg %p4181_p9 }
  0x4c   : > { %p4187_p4 = pnand %p4185_p3, %p4182_p10 }
  0x4e   : > { %4190 = shalt.err (!%p4187_p4)
}
  0x4f   : > { %s4191_s21 = scalar_lea.vmem %s299_s22, 96  ;;  %p4199_p0 = scmp.lt.s32.totalorder %s299_s22, %s299_s22 }
  0x50   : > { %p4192_p11 = scmp.ne.s32.totalorder %s299_s22, %s4191_s21  ;;  %p4200_p1 = scmp.lt.s32.totalorder %s4191_s21, %s4191_s21 }
  0x52   : > { %p4194_p12 = pnand %p4192_p11, %p4473_p8  ;;  %p4201_p2 = por %p4200_p1, %p4199_p0 }
  0x54   : > { %p4195_p13 = pneg %p4194_p12 }
  0x56   : > { %p4202_p5 = pnand %p4201_p2, %p4195_p13 }
  0x58   : > { %4205 = shalt.err (!%p4202_p5)
}
  0x59   : > { %3616 = dma.hbm_to_vmem [thread:$0]  (!%p4459_p6), %s4846_s2, 96, %s299_s22, [#allocation14]  }
  0x5a   : > { %s4206_s30 = scalar_lea.hbm %s4848_s4, 96 }
  0x5b   : > { %p4207_p7 = scmp.ne.s32.totalorder %s4848_s4, %s4206_s30  ;;  %p4213_p3 = scmp.lt.u32.totalorder %s4206_s30, %s4848_s4 }
  0x5d   : > { %p4209_p9 = pnand %p4207_p7, %p4473_p8 }
  0x5f   : > { %p4210_p10 = pneg %p4209_p9 }
  0x61   : > { %p4215_p4 = pnand %p4213_p3, %p4210_p10 }
  0x63   : > { %4218 = shalt.err (!%p4215_p4)
}
  0x64   : > { %s4219_s25 = scalar_lea.vmem %s323_s24, 96  ;;  %p4227_p0 = scmp.lt.s32.totalorder %s323_s24, %s323_s24 }
  0x65   : > { %p4220_p11 = scmp.ne.s32.totalorder %s323_s24, %s4219_s25  ;;  %p4228_p1 = scmp.lt.s32.totalorder %s4219_s25, %s4219_s25 }
  0x67   : > { %p4222_p12 = pnand %p4220_p11, %p4473_p8  ;;  %p4229_p2 = por %p4228_p1, %p4227_p0 }
  0x69   : > { %p4223_p13 = pneg %p4222_p12 }
  0x6b   : > { %p4230_p5 = pnand %p4229_p2, %p4223_p13 }
  0x6d   : > { %4233 = shalt.err (!%p4230_p5)
}
  0x6e   : > { %3622 = dma.hbm_to_vmem [thread:$0]  (!%p4459_p6), %s4848_s4, 96, %s323_s24, [#allocation17]  }
  0x6f   : > { %s4366_s28 = smov [#allocation19]   ;;  %s4234_s29 = scalar_lea.hbm %s4849_s5, 96 }
  0x70   : > { %s333_s18 = sshll.u32 %s4366_s28, 4  ;;  %p4235_p10 = scmp.ne.s32.totalorder %s4849_s5, %s4234_s29  ;;  %s334_s18 = int_to_ptr.vmem [resolvable:$true] %s333_s18 }
  0x71   : > { %p4241_p11 = scmp.lt.u32.totalorder %s4234_s29, %s4849_s5 }
  0x72   : > { %p4237_p3 = pnand %p4235_p10, %p4473_p8 }
  0x74   : > { %p4238_p4 = pneg %p4237_p3 }
  0x76   : > { %p4243_p12 = pnand %p4241_p11, %p4238_p4 }
  0x78   : > { %4246 = shalt.err (!%p4243_p12)
}
  0x79   : > { %s4247_s24 = scalar_lea.vmem %s334_s18, 96  ;;  %p4255_p2 = scmp.lt.s32.totalorder %s334_s18, %s334_s18 }
  0x7a   : > { %p4248_p13 = scmp.ne.s32.totalorder %s334_s18, %s4247_s24  ;;  %p4256_p5 = scmp.lt.s32.totalorder %s4247_s24, %s4247_s24 }
  0x7c   : > { %p4250_p0 = pnand %p4248_p13, %p4473_p8  ;;  %p4257_p9 = por %p4256_p5, %p4255_p2 }
  0x7e   : > { %p4251_p1 = pneg %p4250_p0 }
  0x80   : > { %p4258_p7 = pnand %p4257_p9, %p4251_p1 }
  0x82   : > { %4261 = shalt.err (!%p4258_p7)
}
  0x83   : > { %3625 = dma.hbm_to_vmem [thread:$0]  (!%p4459_p6), %s4849_s5, 96, %s334_s18, [#allocation20]  }
  0x84   : > { %p4865_p10 = scmp.lt.s32.totalorder %s4358_s13, 2  ;;  %p4866_p3 = scmp.eq.s32.totalorder %s4358_s13, 0 }
  0x85   : > { %s4367_s27 = smov [#allocation10]   ;;  %s4262_s19 = scalar_lea.hbm %s4844_s0, 768 }
  0x86   : > { %p4572_p4 = pnand %p4866_p3, %p4865_p10  ;;  %s368_s25 = sshll.u32 %s4367_s27, 4  ;;  %s369_s25 = int_to_ptr.vmem [resolvable:$true] %s368_s25 }
  0x87   : > { %p4263_p8 = scmp.ne.s32.totalorder %s4844_s0, %s4262_s19  ;;  %p4269_p11 = scmp.lt.u32.totalorder %s4262_s19, %s4844_s0 }
  0x88   : > { %p4264_p6 = pneg %p4572_p4 }
  0x8a   : > { %p4265_p7 = pnand %p4264_p6, %p4263_p8 }
  0x8c   : > { %p4266_p9 = pneg %p4265_p7 }
  0x8e   : > { %p4271_p12 = pnand %p4269_p11, %p4266_p9 }
  0x90   : > { %4274 = shalt.err (!%p4271_p12)
}
  0x91   : > { %s4275_s29 = scalar_lea.vmem %s369_s25, 768  ;;  %s4282_s1 = scalar_lea.vmem %s369_s25, 1536 }
  0x92   : > { %p4276_p13 = scmp.ne.s32.totalorder %s369_s25, %s4275_s29  ;;  %p4283_p2 = scmp.lt.s32.totalorder %s369_s25, %s369_s25 }
  0x93   : > { %p4284_p5 = scmp.lt.s32.totalorder %s4282_s1, %s4275_s29 }
  0x94   : > { %p4278_p0 = pnand %p4276_p13, %p4264_p6 }
  0x95   : > { %p4285_p10 = por %p4284_p5, %p4283_p2 }
  0x96   : > { %p4279_p1 = pneg %p4278_p0 }
  0x98   : > { %p4286_p3 = pnand %p4285_p10, %p4279_p1 }
  0x9a   : > { %4289 = shalt.err (!%p4286_p3)
}
  0x9b   : > { %3629 = dma.hbm_to_vmem [thread:$0]  (!%p4572_p4), %s4844_s0, 768, %s369_s25, [#allocation11]  }
  0x9c   : > { %p4868_p8 = scmp.ne.s32.totalorder %s4860_s15, 0 }
  0x9d   : > { %p4869_p7 = scmp.ne.s32.totalorder (!%p4868_p8), %s4861_s16, 0 }
  0x9e   : > { %377 = sbr.rel (%p4868_p8) target bundleno = 1040 (0x410), region = 52 }
  0xa5   : > { %4329 = dma.done.wait (%p4869_p7), [#allocation11], 768  }
  0xa6   : > { %4331 = vsyncadd (%p4869_p7), [#allocation11], 4294966528 }
  0xa7   : > { %4333 = dma.done.wait (%p4869_p7), [#allocation14], 192  }
  0xa8   : > { %4335 = vsyncadd (%p4869_p7), [#allocation14], 4294967104 }
  0xa9   : > { %4337 = dma.done.wait (%p4869_p7), [#allocation17], 36960  }
  0xaa   : > { %4339 = vsyncadd (%p4869_p7), [#allocation17], 4294930336 }
  0xab   : > { %4341 = dma.done.wait (%p4869_p7), [#allocation20], 96  }
  0xac   : > { %4343 = vsyncadd (%p4869_p7), [#allocation20], 4294967200  ;;  %p3251_p4 = scmp.ne.s32.totalorder %s4350_s11, 0 }
  0xad   : > { %v459_v0 = vlaneseq (!%p3251_p4)  ;;  %v4611_v1 = vld [vmem:[#allocation10] sm:$0x3f] (!%p3251_p4)  ;;  %vm478_vm0 = vcmask (!%p3251_p4), 1045504   ;;  %v4368_v2 = vmov (!%p3251_p4), 1966171168   ;;  %v4369_v14 = vmov (!%p3251_p4), 0.0  }
  0xae   : > { %454 = sbr.rel (%p3251_p4) target bundleno = 249 (0xf9), region = 80  ;;  %v531_v3 = vunpack.c.l.s4 (!%p3251_p4), %v4368_v2  ;;  %v4613_v4 = vld [vmem:[#allocation10 + $0x8] sm:$0x3f] (!%p3251_p4)  ;;  %v4615_v5 = vld [vmem:[#allocation10 + $0x10] sm:$0x3f] (!%p3251_p4)  ;;  %v575_v7 = vmul.f32 (!%p3251_p4), %v4611_v1, %v4611_v1  ;;  %v479_v16 = vsel (!%p3251_p4), %vm478_vm0, %v4611_v1, 0.0 }
  0xaf   : > { %v4617_v6 = vld [vmem:[#allocation10 + $0x18] sm:$0x3f] (!%p3251_p4)  ;;  %vm4621_vm1 = vcmp.lt.s32.totalorder (!%p3251_p4), %v459_v0, 768  ;;  %v534_v9 = vshrl.u32 (!%p3251_p4), %v459_v0, 7  ;;  %v4625_v10 = vld [vmem:[#allocation10 + $0x20] sm:$0x3f] (!%p3251_p4)  ;;  %v576_v12 = vmul.f32 (!%p3251_p4), %v4613_v4, %v4613_v4  ;;  %v577_v13 = vmul.f32 (!%p3251_p4), %v4615_v5, %v4615_v5 }
  0xb0   : > { %v4627_v11 = vld [vmem:[#allocation10 + $0x28] sm:$0x3f] (!%p3251_p4)  ;;  %463 = vst.msk [vmem:[#allocation2] sm:$0x3f] (!%p3251_p4), %vm4621_vm1, %v4369_v14  ;;  %v532_v15 = vunpack.c.0.s8 (!%p3251_p4), %v531_v3  ;;  %464 = vst.msk [vmem:[#allocation3] sm:$0x3f] (!%p3251_p4), %vm4621_vm1, %v4369_v14  ;;  %v578_v33 = vmul.f32 (!%p3251_p4), %v4617_v6, %v4617_v6  ;;  %v579_v34 = vmul.f32 (!%p3251_p4), %v4625_v10, %v4625_v10 }
  0xb1   : > { %v486_v17 = vsel (!%p3251_p4), %vm478_vm0, %v4613_v4, 0.0  ;;  %v493_v18 = vsel (!%p3251_p4), %vm478_vm0, %v4615_v5, 0.0  ;;  %v480_v19 = vrot.slane (!%p3251_p4), %v479_v16, 4  ;;  %v500_v22 = vsel (!%p3251_p4), %vm478_vm0, %v4617_v6, 0.0 }
  0xb2   : > { %v487_v20 = vrot.slane (!%p3251_p4), %v486_v17, 4  ;;  %v494_v21 = vrot.slane (!%p3251_p4), %v493_v18, 4  ;;  %v4647_v23 = vsub.s32 (!%p3251_p4), %v532_v15, %v534_v9  ;;  %v501_v24 = vrot.slane (!%p3251_p4), %v500_v22, 4 }
  0xb3   : > { %v507_v25 = vsel (!%p3251_p4), %vm478_vm0, %v4625_v10, 0.0  ;;  %v514_v26 = vsel (!%p3251_p4), %vm478_vm0, %v4627_v11, 0.0  ;;  %v481_v27 = vadd.f32 (!%p3251_p4), %v480_v19, %v479_v16  ;;  %v580_v41 = vmul.f32 (!%p3251_p4), %v4627_v11, %v4627_v11 }
  0xb4   : > { %v488_v28 = vadd.f32 (!%p3251_p4), %v487_v20, %v486_v17  ;;  %v495_v29 = vadd.f32 (!%p3251_p4), %v494_v21, %v493_v18  ;;  %v508_v30 = vrot.slane (!%p3251_p4), %v507_v25, 4  ;;  %v502_v31 = vadd.f32 (!%p3251_p4), %v501_v24, %v500_v22 }
  0xb5   : > { %v515_v32 = vrot.slane %v514_v26, 4  ;;  %v482_v35 = vrot.slane %v481_v27, 2  ;;  %v581_v42 = vsel %vm478_vm0, %v575_v7, 0.0  ;;  %v588_v50 = vsel %vm478_vm0, %v576_v12, 0.0 }
  0xb6   : > { %v489_v36 = vrot.slane %v488_v28, 2  ;;  %v496_v37 = vrot.slane %v495_v29, 2  ;;  %v509_v38 = vadd.f32 %v508_v30, %v507_v25  ;;  %v503_v39 = vrot.slane %v502_v31, 2 }
  0xb7   : > { %v516_v40 = vadd.f32 %v515_v32, %v514_v26  ;;  %v483_v43 = vadd.f32 %v482_v35, %v481_v27  ;;  %v582_v49 = vrot.slane %v581_v42, 4  ;;  %v589_v58 = vrot.slane %v588_v50, 4 }
  0xb8   : > { %v490_v44 = vadd.f32 %v489_v36, %v488_v28  ;;  %v497_v45 = vadd.f32 %v496_v37, %v495_v29  ;;  %v510_v46 = vrot.slane %v509_v38, 2  ;;  %v504_v47 = vadd.f32 %v503_v39, %v502_v31 }
  0xb9   : > { %v517_v48 = vrot.slane %v516_v40, 2  ;;  %v484_v51 = vrot.slane %v483_v43, 1  ;;  %v583_v57 = vadd.f32 %v582_v49, %v581_v42  ;;  %v590_v3 = vadd.f32 %v589_v58, %v588_v50 }
  0xba   : > { %v491_v52 = vrot.slane %v490_v44, 1  ;;  %v498_v53 = vrot.slane %v497_v45, 1  ;;  %v511_v54 = vadd.f32 %v510_v46, %v509_v38  ;;  %v505_v55 = vrot.slane %v504_v47, 1 }
  0xbb   : > { %v518_v56 = vadd.f32 %v517_v48, %v516_v40  ;;  %v485_v59 = vadd.f32 %v484_v51, %v483_v43  ;;  %v584_v2 = vrot.slane %v583_v57, 2  ;;  %v595_v12 = vsel %vm478_vm0, %v577_v13, 0.0 }
  0xbc   : > { %v492_v60 = vadd.f32 %v491_v52, %v490_v44  ;;  %v499_v61 = vadd.f32 %v498_v53, %v497_v45  ;;  %v512_v62 = vrot.slane %v511_v54, 1  ;;  %v506_v63 = vadd.f32 %v505_v55, %v504_v47  ;;  %v477_v44 = vld [vmem:[#allocation2] sm:$0x3f] }
  0xbd   : > { %v519_v0 = vrot.slane %v518_v56, 1  ;;  %v602_v15 = vsel %vm478_vm0, %v578_v33, 0.0  ;;  %v585_v18 = vadd.f32 %v584_v2, %v583_v57  ;;  %v591_v19 = vrot.slane %v590_v3, 2 }
  0xbe   : > { %v513_v7 = vadd.f32 %v512_v62, %v511_v54  ;;  %v527_v9 = vcombine.low %v485_v59, %v492_v60  ;;  %v528_v17 = vcombine.low %v499_v61, %v506_v63  ;;  %v596_v21 = vrot.slane %v595_v12, 4 }
  0xbf   : > { %v520_v16 = vadd.f32 %v519_v0, %v518_v56  ;;  %v603_v22 = vrot.slane %v602_v15, 4  ;;  %v609_v24 = vsel %vm478_vm0, %v579_v34, 0.0  ;;  %v586_v27 = vrot.slane %v585_v18, 1 }
  0xc0   : > { %v536_v20 = vrot.slane %v527_v9, %v4647_v23  ;;  %v543_v26 = vrot.slane %v528_v17, %v4647_v23  ;;  %v592_v28 = vadd.f32 %v591_v19, %v590_v3  ;;  %v597_v29 = vadd.f32 %v596_v21, %v595_v12  ;;  %v574_v9 = vld [vmem:[#allocation3] sm:$0x3f] }
  0xc1   : > { %v529_v25 = vcombine.low %v513_v7, %v520_v16  ;;  %v604_v30 = vadd.f32 %v603_v22, %v602_v15  ;;  %v610_v13 = vrot.slane %v609_v24, 4  ;;  %v616_v31 = vsel %vm478_vm0, %v580_v41, 0.0  ;;  %v713_v21 = vld [vmem:[#allocation13] sm:$0x3f] }
  0xc2   : > { %v551_v33 = vcombine.low %v536_v20, %v543_v26  ;;  %v587_v35 = vadd.f32 %v586_v27, %v585_v18  ;;  %v593_v36 = vrot.slane %v592_v28, 1  ;;  %v598_v37 = vrot.slane %v597_v29, 2 }
  0xc3   : > { %v550_v32 = vrot.slane %v529_v25, %v4647_v23  ;;  %v605_v38 = vrot.slane %v604_v30, 2  ;;  %v611_v39 = vadd.f32 %v610_v13, %v609_v24  ;;  %v617_v40 = vrot.slane %v616_v31, 4  ;;  %v716_v25 = vld [vmem:[#allocation15] sm:$0x3f] }
  0xc4   : > { %v558_v34 = vrot.slane %v551_v33, %v4647_v23  ;;  %v594_v43 = vadd.f32 %v593_v36, %v592_v28  ;;  %vm465_vm2 = vcmask 0   ;;  %v599_v45 = vadd.f32 %v598_v37, %v597_v29 }
  0xc5   : > { %v565_v42 = vrot.slane %v550_v32, %v4647_v23  ;;  %v606_v46 = vadd.f32 %v605_v38, %v604_v30  ;;  %v612_v47 = vrot.slane %v611_v39, 2  ;;  %v618_v41 = vadd.f32 %v617_v40, %v616_v31  ;;  %466 = vst.msk [vmem:[#allocation6] sm:$0x1] %vm465_vm2, %v4369_v14 }
  0xc6   : > { %v629_v49 = vcombine.low %v587_v35, %v594_v43  ;;  %vm467_vm3 = vcmask 7168   ;;  %v600_v50 = vrot.slane %v599_v45, 1  ;;  %v3549_v55 = vpack.c.bf16 %v4613_v4, %v4611_v1 }
  0xc7   : > { %v566_v48 = vcombine.low %v558_v34, %v565_v42  ;;  %v607_v51 = vrot.slane %v606_v46, 1  ;;  %v613_v52 = vadd.f32 %v612_v47, %v611_v39  ;;  %v619_v53 = vrot.slane %v618_v41, 2  ;;  %468 = vst.msk [vmem:[#allocation7] sm:$0xff] %vm467_vm3, %v4369_v14 }
  0xc8   : > { %v3550_v56 = vpack.c.bf16 %v4617_v6, %v4615_v5  ;;  %v601_v57 = vadd.f32 %v600_v50, %v599_v45  ;;  %699 = vst [vmem:[#allocation8] sm:$0x77] %v3549_v55  ;;  %v3551_v61 = vpack.c.bf16 %v4627_v11, %v4625_v10  ;;  %v638_v1 = vrot.slane %v629_v49, %v4647_v23 }
  0xc9   : > { %v568_v54 = vadd.f32 %v566_v48, %v477_v44  ;;  %v608_v58 = vadd.f32 %v607_v51, %v606_v46  ;;  %v614_v59 = vrot.slane %v613_v52, 1  ;;  %v620_v60 = vadd.f32 %v619_v53, %v618_v41 }
  0xca   : > { %700 = vst [vmem:[#allocation8 + $0x8] sm:$0x77] %v3550_v56  ;;  %701 = vst [vmem:[#allocation8 + $0x10] sm:$0x77] %v3551_v61 }
  0xcb   : > { %573 = vst.msk [vmem:[#allocation2] sm:$0x3f] %vm4621_vm1, %v568_v54  ;;  %v615_v14 = vadd.f32 %v614_v59, %v613_v52  ;;  %v621_v62 = vrot.slane %v620_v60, 1  ;;  %v630_v63 = vcombine.low %v601_v57, %v608_v58 }
  0xcd   : > { %v622_v4 = vadd.f32 %v621_v62, %v620_v60  ;;  %v645_v5 = vrot.slane %v630_v63, %v4647_v23 }
  0xcf   : > { %v631_v6 = vcombine.low %v615_v14, %v622_v4  ;;  %v653_v0 = vcombine.low %v638_v1, %v645_v5 }
  0xd1   : > { %v652_v2 = vrot.slane %v631_v6, %v4647_v23  ;;  %v660_v3 = vrot.slane %v653_v0, %v4647_v23 }
  0xd2   : > { %v705_v11 = vld [vmem:[#allocation2] sm:$0x3f] }
  0xd3   : > { %v667_v7 = vrot.slane %v652_v2, %v4647_v23  ;;  %v706_v15 = vmul.f32 0.16666667, %v705_v11 }
  0xd5   : > { %v668_v12 = vcombine.low %v660_v3, %v667_v7  ;;  %v709_v16 = vmul.f32 %v706_v15, %v706_v15 }
  0xd7   : > { %v670_v10 = vadd.f32 %v668_v12, %v574_v9 }
  0xd9   : > { %671 = vst.msk [vmem:[#allocation3] sm:$0x3f] %vm4621_vm1, %v670_v10 }
  0xe0   : > { %v707_v17 = vld [vmem:[#allocation3] sm:$0x3f] }
  0xe1   : > { %v708_v18 = vmul.f32 0.16666667, %v707_v17 }
  0xe3   : > { %v710_v19 = vsub.f32 %v708_v18, %v709_v16 }
  0xe5   : > { %v711_v20 = vadd.f32 1e-05, %v710_v19 }
  0xe7   : > { %3680 = vrsqrt.f32 %v711_v20 }
  0xf1   : > { %v3681_v22 = vpop.eup %3680 }
  0xf2   : > { %v714_v24 = vmul.f32 %v3681_v22, %v713_v21 }
  0xf4   : > { %715 = vst.msk [vmem:[#allocation4] sm:$0x3f] %vm4621_vm1, %v714_v24  ;;  %v717_v23 = vmul.f32 %v714_v24, %v706_v15 }
  0xf6   : > { %v718_v26 = vsub.f32 %v716_v25, %v717_v23 }
  0xf8   : > { %719 = vst.msk [vmem:[#allocation5] sm:$0x3f] %vm4621_vm1, %v718_v26 }
  0xf9 PF: > { %p3255_p6 = scmp.ne.s32.totalorder %s4350_s11, 1 }
  0xfa   : > { %v3682_v27 = vld [vmem:[#allocation16 + $0x4] ss:$24 sps:$4 sm:$0xff] (!%p3255_p6)   ;;  %v3686_v29 = vld [vmem:[#allocation16] ss:$24 sps:$4 sm:$0xff] (!%p3255_p6)   ;;  %v3688_v13 = vld [vmem:[#allocation16 + $0x34] ss:$24 sps:$4 sm:$0xff] (!%p3255_p6)   ;;  %v739_v61 = vlaneseq (!%p3255_p6) }
  0xfb   : > { %723 = sbr.rel (%p3255_p6) target bundleno = 1015 (0x3f7), region = 92  ;;  %v3684_v28 = vld [vmem:[#allocation16 + $0x304] ss:$24 sps:$4 sm:$0xff] (!%p3255_p6)   ;;  %2578 = vmatprep.subr.bf16.mxu1 (!%p3255_p6), %v3682_v27  ;;  %v3687_v30 = vld [vmem:[#allocation16 + $0x300] ss:$24 sps:$4 sm:$0xff] (!%p3255_p6)   ;;  %vm2991_vm4 = vcmask (!%p3255_p6), 1045504  }
  0xfc   : > { %2619 = vmatprep.subr.bf16.mxu0 (!%p3255_p6), %v3684_v28  ;;  %2579 = vmatpush1.bf16.msra.mxu1 (!%p3255_p6), %v3686_v29  ;;  %v3690_v31 = vld [vmem:[#allocation16 + $0x334] ss:$24 sps:$4 sm:$0xff] (!%p3255_p6)   ;;  %v3692_v32 = vld [vmem:[#allocation16 + $0x30] ss:$24 sps:$4 sm:$0xff] (!%p3255_p6)   ;;  %v3694_v8 = vld [vmem:[#allocation16 + $0x64] ss:$24 sps:$4 sm:$0xff] (!%p3255_p6)  }
  0xfd   : > { %2620 = vmatpush1.bf16.msra.mxu0 (!%p3255_p6), %v3687_v30  ;;  %2580 = vmatprep.subr.bf16.mxu1 (!%p3255_p6), %v3688_v13  ;;  %v3693_v33 = vld [vmem:[#allocation16 + $0x330] ss:$24 sps:$4 sm:$0xff] (!%p3255_p6)   ;;  %v3696_v35 = vld [vmem:[#allocation16 + $0x364] ss:$24 sps:$4 sm:$0xff] (!%p3255_p6)   ;;  %v3698_v36 = vld [vmem:[#allocation16 + $0x60] ss:$24 sps:$4 sm:$0xff] (!%p3255_p6)  }
  0xfe   : > { %2621 = vmatprep.subr.bf16.mxu0 (!%p3255_p6), %v3690_v31  ;;  %v3699_v37 = vld [vmem:[#allocation16 + $0x360] ss:$24 sps:$4 sm:$0xff] (!%p3255_p6)   ;;  %v3700_v38 = vld [vmem:[#allocation16 + $0x94] ss:$24 sps:$4 sm:$0xff] (!%p3255_p6)   ;;  %v3704_v40 = vld [vmem:[#allocation16 + $0x90] ss:$24 sps:$4 sm:$0xff] (!%p3255_p6)  }
  0xff   : > { %v3702_v39 = vld [vmem:[#allocation16 + $0x394] ss:$24 sps:$4 sm:$0xff] (!%p3255_p6)   ;;  %v3705_v34 = vld [vmem:[#allocation16 + $0x390] ss:$24 sps:$4 sm:$0xff] (!%p3255_p6)   ;;  %v3706_v42 = vld [vmem:[#allocation16 + $0xc4] ss:$24 sps:$4 sm:$0xff] (!%p3255_p6)  }
 0x100   : > { %2581 = vmatpush1.bf16.msra.mxu1 (!%p3255_p6), %v3692_v32  ;;  %v3708_v43 = vld [vmem:[#allocation16 + $0x3c4] ss:$24 sps:$4 sm:$0xff] (!%p3255_p6)   ;;  %v3710_v44 = vld [vmem:[#allocation16 + $0xc0] ss:$24 sps:$4 sm:$0xff] (!%p3255_p6)   ;;  %v3712_v46 = vld [vmem:[#allocation16 + $0xf4] ss:$24 sps:$4 sm:$0xff] (!%p3255_p6)  }
 0x101   : > { %2622 = vmatpush1.bf16.msra.mxu0 (!%p3255_p6), %v3693_v33  ;;  %2582 = vmatprep.subr.bf16.mxu1 (!%p3255_p6), %v3694_v8  ;;  %v3711_v45 = vld [vmem:[#allocation16 + $0x3c0] ss:$24 sps:$4 sm:$0xff] (!%p3255_p6)   ;;  %v3714_v47 = vld [vmem:[#allocation16 + $0x3f4] ss:$24 sps:$4 sm:$0xff] (!%p3255_p6)   ;;  %v3716_v41 = vld [vmem:[#allocation16 + $0xf0] ss:$24 sps:$4 sm:$0xff] (!%p3255_p6)  }
 0x102   : > { %2623 = vmatprep.subr.bf16.mxu0 %v3696_v35  ;;  %v3717_v48 = vld [vmem:[#allocation16 + $0x3f0] ss:$24 sps:$4 sm:$0xff]   ;;  %v3718_v49 = vld [vmem:[#allocation16 + $0x124] ss:$24 sps:$4 sm:$0xff]   ;;  %v3722_v51 = vld [vmem:[#allocation16 + $0x120] ss:$24 sps:$4 sm:$0xff]  }
 0x103   : > { %v3720_v50 = vld [vmem:[#allocation16 + $0x424] ss:$24 sps:$4 sm:$0xff]   ;;  %v3723_v52 = vld [vmem:[#allocation16 + $0x420] ss:$24 sps:$4 sm:$0xff]   ;;  %v3724_v53 = vld [vmem:[#allocation16 + $0x154] ss:$24 sps:$4 sm:$0xff]  }
 0x104   : > { %2583 = vmatpush1.bf16.msra.mxu1 %v3698_v36  ;;  %v3726_v54 = vld [vmem:[#allocation16 + $0x454] ss:$24 sps:$4 sm:$0xff]   ;;  %v3728_v55 = vld [vmem:[#allocation16 + $0x150] ss:$24 sps:$4 sm:$0xff]   ;;  %v3730_v57 = vld [vmem:[#allocation16 + $0x184] ss:$24 sps:$4 sm:$0xff]  }
 0x105   : > { %2624 = vmatpush1.bf16.msra.mxu0 %v3699_v37  ;;  %2584 = vmatprep.subr.bf16.mxu1 %v3700_v38  ;;  %v3729_v56 = vld [vmem:[#allocation16 + $0x450] ss:$24 sps:$4 sm:$0xff]   ;;  %v3732_v58 = vld [vmem:[#allocation16 + $0x484] ss:$24 sps:$4 sm:$0xff]   ;;  %v3734_v59 = vld [vmem:[#allocation16 + $0x180] ss:$24 sps:$4 sm:$0xff]  }
 0x106   : > { %2625 = vmatprep.subr.bf16.mxu0 %v3702_v39  ;;  %v3735_v60 = vld [vmem:[#allocation16 + $0x480] ss:$24 sps:$4 sm:$0xff]   ;;  %v3736_v14 = vld [vmem:[#allocation16 + $0x1b4] ss:$24 sps:$4 sm:$0xff]   ;;  %v3740_v63 = vld [vmem:[#allocation16 + $0x1b0] ss:$24 sps:$4 sm:$0xff]  }
 0x107   : > { %v3738_v62 = vld [vmem:[#allocation16 + $0x4b4] ss:$24 sps:$4 sm:$0xff]   ;;  %v4692_v1 = vshrl.u32 %v739_v61, 7  ;;  %v3741_v4 = vld [vmem:[#allocation16 + $0x4b0] ss:$24 sps:$4 sm:$0xff]   ;;  %s3005_s11 = sld [smem:[#allocation9]] }
 0x108   : > { %2585 = vmatpush1.bf16.msra.mxu1 %v3704_v40  ;;  %v3742_v5 = vld [vmem:[#allocation16 + $0x1e4] ss:$24 sps:$4 sm:$0xff]   ;;  %v3746_v0 = vld [vmem:[#allocation16 + $0x1e0] ss:$24 sps:$4 sm:$0xff]   ;;  %v3748_v9 = vld [vmem:[#allocation16 + $0x214] ss:$24 sps:$4 sm:$0xff]  }
 0x109   : > { %2626 = vmatpush1.bf16.msra.mxu0 %v3705_v34  ;;  %2586 = vmatprep.subr.bf16.mxu1 %v3706_v42  ;;  %v3744_v6 = vld [vmem:[#allocation16 + $0x4e4] ss:$24 sps:$4 sm:$0xff]   ;;  %v3747_v2 = vld [vmem:[#allocation16 + $0x4e0] ss:$24 sps:$4 sm:$0xff]   ;;  %v4695_v3 = vsub.s32 1, %v4692_v1  ;;  %v4698_v7 = vsub.s32 3, %v4692_v1 }
 0x10a   : > { %2627 = vmatprep.subr.bf16.mxu0 %v3708_v43  ;;  %v3750_v12 = vld [vmem:[#allocation16 + $0x514] ss:$24 sps:$4 sm:$0xff]   ;;  %v3752_v10 = vld [vmem:[#allocation16 + $0x210] ss:$24 sps:$4 sm:$0xff]   ;;  %v4700_v15 = vld [vmem:[#allocation4] sm:$0x3f] }
 0x10b   : > { %v3753_v11 = vld [vmem:[#allocation16 + $0x510] ss:$24 sps:$4 sm:$0xff]   ;;  %v729_v17 = vld [vmem:[#allocation8] sm:$0x77]  ;;  %v746_v18 = vrot.slane %v4700_v15, %v4695_v3  ;;  %v754_v20 = vrot.slane %v4700_v15, %v4698_v7  ;;  %v4713_v29 = vsub.s32 0, %v4692_v1  ;;  %v4716_v31 = vsub.s32 2, %v4692_v1 }
 0x10c   : > { %2587 = vmatpush1.bf16.msra.mxu1 %v3710_v44  ;;  %v4702_v16 = vld [vmem:[#allocation5] sm:$0x3f]  ;;  %v733_v22 = vunpack.c.h.bf16 %v729_v17  ;;  %v3758_v30 = vld [vmem:[#allocation16 + $0x240] ss:$24 sps:$4 sm:$0xff]   ;;  %v3760_v32 = vld [vmem:[#allocation16 + $0x274] ss:$24 sps:$4 sm:$0xff]   ;;  %v732_v40 = vunpack.c.l.bf16 %v729_v17 }
 0x10d   : > { %2628 = vmatpush1.bf16.msra.mxu0 %v3711_v45  ;;  %2588 = vmatprep.subr.bf16.mxu1 %v3712_v46  ;;  %v730_v19 = vld [vmem:[#allocation8 + $0x8] sm:$0x77]  ;;  %v783_v24 = vrot.slane %v4702_v16, %v4695_v3  ;;  %v791_v23 = vrot.slane %v4702_v16, %v4698_v7  ;;  %v3759_v13 = vld [vmem:[#allocation16 + $0x540] ss:$24 sps:$4 sm:$0xff]   ;;  %v3762_v35 = vld [vmem:[#allocation16 + $0x574] ss:$24 sps:$4 sm:$0xff]   ;;  %v742_v34 = vrot.slane %v4700_v15, %v4713_v29 }
 0x10e   : > { %2629 = vmatprep.subr.bf16.mxu0 %v3714_v47  ;;  %v3754_v21 = vld [vmem:[#allocation16 + $0x244] ss:$24 sps:$4 sm:$0xff]   ;;  %v735_v25 = vunpack.c.h.bf16 %v730_v19  ;;  %v770_v27 = vmul.f32 %v746_v18, %v733_v22  ;;  %v3764_v38 = vld [vmem:[#allocation16 + $0x270] ss:$24 sps:$4 sm:$0xff]   ;;  %v734_v42 = vunpack.c.l.bf16 %v730_v19  ;;  %v750_v43 = vrot.slane %v4700_v15, %v4716_v31  ;;  %v3770_v46 = vld [vmem:[#allocation16 + $0x2a0] ss:$24 sps:$4 sm:$0xff]  }
 0x10f   : > { %v3756_v26 = vld [vmem:[#allocation16 + $0x544] ss:$24 sps:$4 sm:$0xff]   ;;  %v3765_v39 = vld [vmem:[#allocation16 + $0x570] ss:$24 sps:$4 sm:$0xff]   ;;  %v3771_v47 = vld [vmem:[#allocation16 + $0x5a0] ss:$24 sps:$4 sm:$0xff]  }
 0x110   : > { %2589 = vmatpush1.bf16.msra.mxu1 %v3716_v41  ;;  %v772_v28 = vmul.f32 %v754_v20, %v735_v25  ;;  %v807_v33 = vadd.f32 %v783_v24, %v770_v27  ;;  %v3766_v44 = vld [vmem:[#allocation16 + $0x2a4] ss:$24 sps:$4 sm:$0xff]   ;;  %v769_v41 = vmul.f32 %v742_v34, %v732_v40  ;;  %v3799_v17 = vld [vmem:[#allocation16 + $0x98] ss:$24 sps:$4 sm:$0xff]   ;;  %v3810_v22 = vld [vmem:[#allocation16 + $0x6f4] ss:$24 sps:$4 sm:$0xff]  }
 0x111   : > { %2630 = vmatpush1.bf16.msra.mxu0 %v3717_v48  ;;  %2590 = vmatprep.subr.bf16.mxu1 %v3718_v49  ;;  %v3768_v45 = vld [vmem:[#allocation16 + $0x5a4] ss:$24 sps:$4 sm:$0xff]   ;;  %v779_v48 = vrot.slane %v4702_v16, %v4713_v29  ;;  %v771_v49 = vmul.f32 %v750_v43, %v734_v42  ;;  %v3802_v20 = vld [vmem:[#allocation16 + $0x6c0] ss:$24 sps:$4 sm:$0xff]   ;;  %v4740_v25 = vsub.s32 5, %v4692_v1  ;;  %vm3008_vm5 = vcmask 5120  }
 0x112   : > { %2631 = vmatprep.subr.bf16.mxu0 %v3720_v50  ;;  %v809_v8 = vadd.f32 %v791_v23, %v772_v28  ;;  %v4718_v36 = vpack.c.bf16 %v807_v33, %v807_v33  ;;  %v787_v50 = vrot.slane %v4702_v16, %v4716_v31  ;;  %v3804_v18 = vld [vmem:[#allocation16 + $0x6c4] ss:$24 sps:$4 sm:$0xff]   ;;  %v4743_v23 = vsub.s32 4, %v4692_v1  ;;  %v3811_v27 = vld [vmem:[#allocation16 + $0xf8] ss:$24 sps:$4 sm:$0xff]  }
 0x113   : > { %v3807_v19 = vld [vmem:[#allocation16 + $0xcc] ss:$24 sps:$4 sm:$0xff]   ;;  %v3813_v24 = vld [vmem:[#allocation16 + $0xfc] ss:$24 sps:$4 sm:$0xff]   ;;  %v3817_v34 = vld [vmem:[#allocation16 + $0x128] ss:$24 sps:$4 sm:$0xff]  }
 0x114   : > { %2591 = vmatpush1.bf16.msra.mxu1 %v3722_v51  ;;  %v4720_v37 = vpack.c.bf16 %v809_v8, %v809_v8  ;;  %2610 = vmatprep.mubr.bf16.mxu1 %v4718_v36  ;;  %v3772_v51 = vld [vmem:[#allocation16 + $0x2d4] ss:$24 sps:$4 sm:$0xff]   ;;  %v3816_v28 = vld [vmem:[#allocation16 + $0x724] ss:$24 sps:$4 sm:$0xff]   ;;  %v3814_v8 = vld [vmem:[#allocation16 + $0x720] ss:$24 sps:$4 sm:$0xff]   ;;  %v795_v40 = vrot.slane %v4702_v16, %v4743_v23 }
 0x115   : > { %2632 = vmatpush1.bf16.msra.mxu0 %v3723_v52  ;;  %2592 = vmatprep.subr.bf16.mxu1 %v3724_v53  ;;  %v3774_v52 = vld [vmem:[#allocation16 + $0x5d4] ss:$24 sps:$4 sm:$0xff]   ;;  %v3776_v53 = vld [vmem:[#allocation16 + $0x2d0] ss:$24 sps:$4 sm:$0xff]   ;;  %vm3064_vm12 = vcmask 0  }
 0x116   : > { %2633 = vmatprep.subr.bf16.mxu0 %v3726_v54  ;;  %2651 = vmatprep.mubr.bf16.mxu0 %v4720_v37  ;;  %v3777_v54 = vld [vmem:[#allocation16 + $0x5d0] ss:$24 sps:$4 sm:$0xff]   ;;  %v3822_v42 = vld [vmem:[#allocation16 + $0x754] ss:$24 sps:$4 sm:$0xff]  }
 0x117   : > { %v731_v33 = vld [vmem:[#allocation8 + $0x10] sm:$0x77]  ;;  %v3825_v43 = vld [vmem:[#allocation16 + $0x15c] ss:$24 sps:$4 sm:$0xff]  }
 0x118   : > { %2593 = vmatpush1.bf16.msra.mxu1 %v3728_v55  ;;  %v806_v55 = vadd.f32 %v779_v48, %v769_v41  ;;  %v3823_v41 = vld [vmem:[#allocation16 + $0x158] ss:$24 sps:$4 sm:$0xff]   ;;  %v3828_v48 = vld [vmem:[#allocation16 + $0x784] ss:$24 sps:$4 sm:$0xff]  }
 0x119   : > { %2634 = vmatpush1.bf16.msra.mxu0 %v3729_v56  ;;  %2594 = vmatprep.subr.bf16.mxu1 %v3730_v57  ;;  %v808_v56 = vadd.f32 %v787_v50, %v771_v49  ;;  %v3780_v57 = vld [vmem:[#allocation16 + $0x604] ss:$24 sps:$4 sm:$0xff]   ;;  %v3826_v50 = vld [vmem:[#allocation16 + $0x780] ss:$24 sps:$4 sm:$0xff]  }
 0x11a   : > { %2635 = vmatprep.subr.bf16.mxu0 %v3732_v58  ;;  %v3783_v58 = vld [vmem:[#allocation16 + $0xc] ss:$24 sps:$4 sm:$0xff]   ;;  %v4732_v61 = vpack.c.bf16 %v806_v55, %v806_v55  ;;  %v3835_v55 = vld [vmem:[#allocation16 + $0x1b8] ss:$24 sps:$4 sm:$0xff]  }
 0x11c   : > { %2595 = vmatpush1.bf16.msra.mxu1 %v3734_v59  ;;  %v3778_v59 = vld [vmem:[#allocation16 + $0x600] ss:$24 sps:$4 sm:$0xff]  }
 0x11d   : > { %2636 = vmatpush1.bf16.msra.mxu0 %v3735_v60  ;;  %2596 = vmatprep.subr.bf16.mxu1 %v3736_v14  ;;  %v3781_v60 = vld [vmem:[#allocation16 + $0x8] ss:$24 sps:$4 sm:$0xff]   ;;  %v4734_v14 = vpack.c.bf16 %v808_v56, %v808_v56  ;;  %v3840_v56 = vld [vmem:[#allocation16 + $0x7e4] ss:$24 sps:$4 sm:$0xff]  }
 0x11e   : > { %2637 = vmatprep.subr.bf16.mxu0 %v3738_v62  ;;  %v3786_v62 = vld [vmem:[#allocation16 + $0x634] ss:$24 sps:$4 sm:$0xff]  }
 0x120   : > { %2597 = vmatpush1.bf16.msra.mxu1 %v3740_v63  ;;  %v3789_v63 = vld [vmem:[#allocation16 + $0x3c] ss:$24 sps:$4 sm:$0xff]  }
 0x121   : > { %2638 = vmatpush1.bf16.msra.mxu0 %v3741_v4  ;;  %2598 = vmatprep.subr.bf16.mxu1 %v3742_v5  ;;  %v3784_v4 = vld [vmem:[#allocation16 + $0x630] ss:$24 sps:$4 sm:$0xff]  }
 0x122   : > { %2639 = vmatprep.subr.bf16.mxu0 %v3744_v6  ;;  %v3787_v5 = vld [vmem:[#allocation16 + $0x38] ss:$24 sps:$4 sm:$0xff]   ;;  %v3792_v6 = vld [vmem:[#allocation16 + $0x664] ss:$24 sps:$4 sm:$0xff]  }
 0x124   : > { %2599 = vmatpush1.bf16.msra.mxu1 %v3746_v0  ;;  %v3795_v0 = vld [vmem:[#allocation16 + $0x6c] ss:$24 sps:$4 sm:$0xff]  }
 0x125   : > { %2640 = vmatpush1.bf16.msra.mxu0 %v3747_v2  ;;  %2600 = vmatprep.subr.bf16.mxu1 %v3748_v9  ;;  %v3790_v2 = vld [vmem:[#allocation16 + $0x660] ss:$24 sps:$4 sm:$0xff]  }
 0x126   : > { %2641 = vmatprep.subr.bf16.mxu0 %v3750_v12  ;;  %v3793_v9 = vld [vmem:[#allocation16 + $0x68] ss:$24 sps:$4 sm:$0xff]   ;;  %v3798_v12 = vld [vmem:[#allocation16 + $0x694] ss:$24 sps:$4 sm:$0xff]  }
 0x128   : > { %2601 = vmatpush1.bf16.msra.mxu1 %v3752_v10  ;;  %v3801_v10 = vld [vmem:[#allocation16 + $0x9c] ss:$24 sps:$4 sm:$0xff]  }
 0x129   : > { %2642 = vmatpush1.bf16.msra.mxu0 %v3753_v11  ;;  %2602 = vmatprep.subr.bf16.mxu1 %v3754_v21  ;;  %v3796_v11 = vld [vmem:[#allocation16 + $0x690] ss:$24 sps:$4 sm:$0xff]  }
 0x12a   : > { %2643 = vmatprep.subr.bf16.mxu0 %v3756_v26  ;;  %v3805_v21 = vld [vmem:[#allocation16 + $0xc8] ss:$24 sps:$4 sm:$0xff]  }
 0x12b   : > { %v3808_v26 = vld [vmem:[#allocation16 + $0x6f0] ss:$24 sps:$4 sm:$0xff]  }
 0x12c   : > { %2603 = vmatpush1.bf16.msra.mxu1 %v3758_v30  ;;  %v3819_v30 = vld [vmem:[#allocation16 + $0x12c] ss:$24 sps:$4 sm:$0xff]  }
 0x12d   : > { %2644 = vmatpush1.bf16.msra.mxu0 %v3759_v13  ;;  %2604 = vmatprep.subr.bf16.mxu1 %v3760_v32  ;;  %v762_v13 = vrot.slane %v4700_v15, %v4740_v25  ;;  %v758_v32 = vrot.slane %v4700_v15, %v4743_v23  ;;  %v3820_v15 = vld [vmem:[#allocation16 + $0x750] ss:$24 sps:$4 sm:$0xff]  }
 0x12e   : > { %2645 = vmatprep.subr.bf16.mxu0 %v3762_v35  ;;  %v736_v35 = vunpack.c.l.bf16 %v731_v33 }
 0x130   : > { %2605 = vmatpush1.bf16.msra.mxu1 %v3764_v38  ;;  %v737_v38 = vunpack.c.h.bf16 %v731_v33  ;;  %v3882_v33 = vld [vmem:[#allocation16 + $0x33c] ss:$24 sps:$4 sm:$0xff]  }
 0x131   : > { %2646 = vmatpush1.bf16.msra.mxu0 %v3765_v39  ;;  %2606 = vmatprep.subr.bf16.mxu1 %v3766_v44  ;;  %v799_v39 = vrot.slane %v4702_v16, %v4740_v25  ;;  %v3831_v16 = vld [vmem:[#allocation16 + $0x18c] ss:$24 sps:$4 sm:$0xff]  }
 0x132   : > { %2647 = vmatprep.subr.bf16.mxu0 %v3768_v45  ;;  %v774_v44 = vmul.f32 %v762_v13, %v737_v38  ;;  %v773_v45 = vmul.f32 %v758_v32, %v736_v35  ;;  %v3874_v13 = vld [vmem:[#allocation16 + $0x308] ss:$24 sps:$4 sm:$0xff]   ;;  %v3880_v35 = vld [vmem:[#allocation16 + $0x338] ss:$24 sps:$4 sm:$0xff]  }
 0x133   : > { %v3877_v32 = vld [vmem:[#allocation16 + $0x10] ss:$24 sps:$4 sm:$0xff]   ;;  %v3883_v38 = vld [vmem:[#allocation16 + $0x40] ss:$24 sps:$4 sm:$0xff]  }
 0x134   : > { %2607 = vmatpush1.bf16.msra.mxu1 %v3770_v46  ;;  %v811_v46 = vadd.f32 %v799_v39, %v774_v44  ;;  %v3888_v39 = vld [vmem:[#allocation16 + $0x36c] ss:$24 sps:$4 sm:$0xff]  }
 0x135   : > { %2648 = vmatpush1.bf16.msra.mxu0 %v3771_v47  ;;  %2608 = vmatprep.subr.bf16.mxu1 %v3772_v51  ;;  %v4753_v47 = vadd.f32 %v795_v40, %v773_v45  ;;  %v3829_v51 = vld [vmem:[#allocation16 + $0x188] ss:$24 sps:$4 sm:$0xff]   ;;  %v3891_v40 = vld [vmem:[#allocation16 + $0x74] ss:$24 sps:$4 sm:$0xff]   ;;  %v3897_v44 = vld [vmem:[#allocation16 + $0xa4] ss:$24 sps:$4 sm:$0xff]  }
 0x136   : > { %2649 = vmatprep.subr.bf16.mxu0 %v3774_v52  ;;  %v4755_v49 = vpack.c.bf16 %v811_v46, %v811_v46  ;;  %v3834_v52 = vld [vmem:[#allocation16 + $0x7b4] ss:$24 sps:$4 sm:$0xff]   ;;  %v3892_v45 = vld [vmem:[#allocation16 + $0x398] ss:$24 sps:$4 sm:$0xff]  }
 0x137   : > { %v3900_v46 = vld [vmem:[#allocation16 + $0x3cc] ss:$24 sps:$4 sm:$0xff]  }
 0x138   : > { %2609 = vmatpush1.bf16.msra.mxu1 %v3776_v53  ;;  %v3837_v53 = vld [vmem:[#allocation16 + $0x1bc] ss:$24 sps:$4 sm:$0xff]  }
 0x139   : > { %2650 = vmatpush1.bf16.msra.mxu0 %v3777_v54  ;;  %2701 = vmatprep.subr.bf16.mxu1 %v3783_v58  ;;  %v3832_v54 = vld [vmem:[#allocation16 + $0x7b0] ss:$24 sps:$4 sm:$0xff]   ;;  %v3838_v58 = vld [vmem:[#allocation16 + $0x7e0] ss:$24 sps:$4 sm:$0xff]  }
 0x13a   : > { %2660 = vmatprep.subr.bf16.mxu0 %v3780_v57  ;;  %v3843_v57 = vld [vmem:[#allocation16 + $0x1ec] ss:$24 sps:$4 sm:$0xff]  }
 0x13b   : > { %2611 = vmatmul.mubr.bf16.vlgmr.msra.gmra.mrb[0].mxu1 %v4732_v61 }
 0x13c   : > { %2652 = vmatmul.mubr.bf16.vlgmr.msra.gmra.mrb[0].mxu0 %v4734_v14  ;;  %2702 = vmatpush1.bf16.msra.mxu1 %v3781_v60  ;;  %v3846_v60 = vld [vmem:[#allocation16 + $0x814] ss:$24 sps:$4 sm:$0xff]  }
 0x13d   : > { %2661 = vmatpush1.bf16.msra.mxu0 %v3778_v59  ;;  %2703 = vmatprep.subr.bf16.mxu1 %v3789_v63  ;;  %v3841_v59 = vld [vmem:[#allocation16 + $0x1e8] ss:$24 sps:$4 sm:$0xff]  }
 0x13e   : > { %2662 = vmatprep.subr.bf16.mxu0 %v3786_v62  ;;  %2733 = vmatprep.mubr.bf16.mxu1 %v4718_v36  ;;  %v3849_v62 = vld [vmem:[#allocation16 + $0x21c] ss:$24 sps:$4 sm:$0xff]   ;;  %v3844_v63 = vld [vmem:[#allocation16 + $0x810] ss:$24 sps:$4 sm:$0xff]  }
 0x13f   : > { %2692 = vmatprep.mubr.bf16.mxu0 %v4755_v49 }
 0x140   : > { %2704 = vmatpush1.bf16.msra.mxu1 %v3787_v5  ;;  %v3852_v5 = vld [vmem:[#allocation16 + $0x844] ss:$24 sps:$4 sm:$0xff]  }
 0x141   : > { %2663 = vmatpush1.bf16.msra.mxu0 %v3784_v4  ;;  %2705 = vmatprep.subr.bf16.mxu1 %v3795_v0  ;;  %v3847_v4 = vld [vmem:[#allocation16 + $0x218] ss:$24 sps:$4 sm:$0xff]  }
 0x142   : > { %2664 = vmatprep.subr.bf16.mxu0 %v3792_v6  ;;  %v3855_v6 = vld [vmem:[#allocation16 + $0x24c] ss:$24 sps:$4 sm:$0xff]   ;;  %v3850_v0 = vld [vmem:[#allocation16 + $0x840] ss:$24 sps:$4 sm:$0xff]  }
 0x144   : > { %2706 = vmatpush1.bf16.msra.mxu1 %v3793_v9  ;;  %v3858_v9 = vld [vmem:[#allocation16 + $0x874] ss:$24 sps:$4 sm:$0xff]  }
 0x145   : > { %2665 = vmatpush1.bf16.msra.mxu0 %v3790_v2  ;;  %2707 = vmatprep.subr.bf16.mxu1 %v3801_v10  ;;  %v3853_v2 = vld [vmem:[#allocation16 + $0x248] ss:$24 sps:$4 sm:$0xff]  }
 0x146   : > { %2666 = vmatprep.subr.bf16.mxu0 %v3798_v12  ;;  %v3861_v12 = vld [vmem:[#allocation16 + $0x27c] ss:$24 sps:$4 sm:$0xff]   ;;  %v3856_v10 = vld [vmem:[#allocation16 + $0x870] ss:$24 sps:$4 sm:$0xff]  }
 0x148   : > { %2708 = vmatpush1.bf16.msra.mxu1 %v3799_v17  ;;  %v3864_v17 = vld [vmem:[#allocation16 + $0x8a4] ss:$24 sps:$4 sm:$0xff]  }
 0x149   : > { %2667 = vmatpush1.bf16.msra.mxu0 %v3796_v11  ;;  %2709 = vmatprep.subr.bf16.mxu1 %v3807_v19  ;;  %v3859_v11 = vld [vmem:[#allocation16 + $0x278] ss:$24 sps:$4 sm:$0xff]  }
 0x14a   : > { %2668 = vmatprep.subr.bf16.mxu0 %v3804_v18  ;;  %v3867_v18 = vld [vmem:[#allocation16 + $0x2ac] ss:$24 sps:$4 sm:$0xff]   ;;  %v3862_v19 = vld [vmem:[#allocation16 + $0x8a0] ss:$24 sps:$4 sm:$0xff]  }
 0x14c   : > { %2710 = vmatpush1.bf16.msra.mxu1 %v3805_v21  ;;  %v3870_v21 = vld [vmem:[#allocation16 + $0x8d4] ss:$24 sps:$4 sm:$0xff]  }
 0x14d   : > { %2669 = vmatpush1.bf16.msra.mxu0 %v3802_v20  ;;  %2711 = vmatprep.subr.bf16.mxu1 %v3813_v24  ;;  %v3865_v20 = vld [vmem:[#allocation16 + $0x2a8] ss:$24 sps:$4 sm:$0xff]  }
 0x14e   : > { %2670 = vmatprep.subr.bf16.mxu0 %v3810_v22  ;;  %v3873_v22 = vld [vmem:[#allocation16 + $0x2dc] ss:$24 sps:$4 sm:$0xff]   ;;  %v3868_v24 = vld [vmem:[#allocation16 + $0x8d0] ss:$24 sps:$4 sm:$0xff]  }
 0x150   : > { %2712 = vmatpush1.bf16.msra.mxu1 %v3811_v27  ;;  %v3876_v27 = vld [vmem:[#allocation16 + $0x30c] ss:$24 sps:$4 sm:$0xff]  }
 0x151   : > { %2671 = vmatpush1.bf16.msra.mxu0 %v3808_v26  ;;  %2713 = vmatprep.subr.bf16.mxu1 %v3819_v30  ;;  %v3871_v26 = vld [vmem:[#allocation16 + $0x2d8] ss:$24 sps:$4 sm:$0xff]   ;;  %v4760_v30 = vpack.c.bf16 %v4753_v47, %v4753_v47  ;;  %v3903_v47 = vld [vmem:[#allocation16 + $0xd4] ss:$24 sps:$4 sm:$0xff]  }
 0x152   : > { %2672 = vmatprep.subr.bf16.mxu0 %v3816_v28  ;;  %v3879_v28 = vld [vmem:[#allocation16 + $0x14] ss:$24 sps:$4 sm:$0xff]  }
 0x154   : > { %2714 = vmatpush1.bf16.msra.mxu1 %v3817_v34  ;;  %v3886_v34 = vld [vmem:[#allocation16 + $0x368] ss:$24 sps:$4 sm:$0xff]  }
 0x155   : > { %2673 = vmatpush1.bf16.msra.mxu0 %v3814_v8  ;;  %2715 = vmatprep.subr.bf16.mxu1 %v3825_v43  ;;  %v3885_v8 = vld [vmem:[#allocation16 + $0x44] ss:$24 sps:$4 sm:$0xff]  }
 0x156   : > { %2674 = vmatprep.subr.bf16.mxu0 %v3822_v42  ;;  %v3889_v42 = vld [vmem:[#allocation16 + $0x70] ss:$24 sps:$4 sm:$0xff]   ;;  %v3894_v43 = vld [vmem:[#allocation16 + $0x39c] ss:$24 sps:$4 sm:$0xff]  }
 0x158   : > { %2716 = vmatpush1.bf16.msra.mxu1 %v3823_v41  ;;  %v3898_v41 = vld [vmem:[#allocation16 + $0x3c8] ss:$24 sps:$4 sm:$0xff]  }
 0x159   : > { %2675 = vmatpush1.bf16.msra.mxu0 %v3820_v15  ;;  %2717 = vmatprep.subr.bf16.mxu1 %v3831_v16  ;;  %v3895_v15 = vld [vmem:[#allocation16 + $0xa0] ss:$24 sps:$4 sm:$0xff]   ;;  %v3909_v16 = vld [vmem:[#allocation16 + $0x104] ss:$24 sps:$4 sm:$0xff]  }
 0x15a   : > { %2676 = vmatprep.subr.bf16.mxu0 %v3828_v48  ;;  %v3906_v48 = vld [vmem:[#allocation16 + $0x3fc] ss:$24 sps:$4 sm:$0xff]  }
 0x15c   : > { %2718 = vmatpush1.bf16.msra.mxu1 %v3829_v51  ;;  %v3907_v51 = vld [vmem:[#allocation16 + $0x100] ss:$24 sps:$4 sm:$0xff]  }
 0x15d   : > { %2677 = vmatpush1.bf16.msra.mxu0 %v3826_v50  ;;  %2719 = vmatprep.subr.bf16.mxu1 %v3837_v53  ;;  %v3904_v50 = vld [vmem:[#allocation16 + $0x3f8] ss:$24 sps:$4 sm:$0xff]   ;;  %v3915_v53 = vld [vmem:[#allocation16 + $0x134] ss:$24 sps:$4 sm:$0xff]  }
 0x15e   : > { %2678 = vmatprep.subr.bf16.mxu0 %v3834_v52  ;;  %v3912_v52 = vld [vmem:[#allocation16 + $0x42c] ss:$24 sps:$4 sm:$0xff]  }
 0x160   : > { %2720 = vmatpush1.bf16.msra.mxu1 %v3835_v55  ;;  %v3913_v55 = vld [vmem:[#allocation16 + $0x130] ss:$24 sps:$4 sm:$0xff]  }
 0x161   : > { %2679 = vmatpush1.bf16.msra.mxu0 %v3832_v54  ;;  %2721 = vmatprep.subr.bf16.mxu1 %v3843_v57  ;;  %v3910_v54 = vld [vmem:[#allocation16 + $0x428] ss:$24 sps:$4 sm:$0xff]   ;;  %v3921_v57 = vld [vmem:[#allocation16 + $0x164] ss:$24 sps:$4 sm:$0xff]  }
 0x162   : > { %2680 = vmatprep.subr.bf16.mxu0 %v3840_v56  ;;  %v3918_v56 = vld [vmem:[#allocation16 + $0x45c] ss:$24 sps:$4 sm:$0xff]  }
 0x164   : > { %2722 = vmatpush1.bf16.msra.mxu1 %v3841_v59  ;;  %v3919_v59 = vld [vmem:[#allocation16 + $0x160] ss:$24 sps:$4 sm:$0xff]  }
 0x165   : > { %2681 = vmatpush1.bf16.msra.mxu0 %v3838_v58  ;;  %2723 = vmatprep.subr.bf16.mxu1 %v3849_v62  ;;  %v3916_v58 = vld [vmem:[#allocation16 + $0x458] ss:$24 sps:$4 sm:$0xff]   ;;  %v3927_v62 = vld [vmem:[#allocation16 + $0x194] ss:$24 sps:$4 sm:$0xff]  }
 0x166   : > { %2682 = vmatprep.subr.bf16.mxu0 %v3846_v60  ;;  %v3924_v60 = vld [vmem:[#allocation16 + $0x48c] ss:$24 sps:$4 sm:$0xff]  }
 0x168   : > { %2724 = vmatpush1.bf16.msra.mxu1 %v3847_v4  ;;  %v3925_v4 = vld [vmem:[#allocation16 + $0x190] ss:$24 sps:$4 sm:$0xff]  }
 0x169   : > { %2683 = vmatpush1.bf16.msra.mxu0 %v3844_v63  ;;  %2725 = vmatprep.subr.bf16.mxu1 %v3855_v6  ;;  %v3922_v63 = vld [vmem:[#allocation16 + $0x488] ss:$24 sps:$4 sm:$0xff]   ;;  %v3933_v6 = vld [vmem:[#allocation16 + $0x1c4] ss:$24 sps:$4 sm:$0xff]  }
 0x16a   : > { %2684 = vmatprep.subr.bf16.mxu0 %v3852_v5  ;;  %v3930_v5 = vld [vmem:[#allocation16 + $0x4bc] ss:$24 sps:$4 sm:$0xff]  }
 0x16c   : > { %2726 = vmatpush1.bf16.msra.mxu1 %v3853_v2  ;;  %v3931_v2 = vld [vmem:[#allocation16 + $0x1c0] ss:$24 sps:$4 sm:$0xff]  }
 0x16d   : > { %2685 = vmatpush1.bf16.msra.mxu0 %v3850_v0  ;;  %2727 = vmatprep.subr.bf16.mxu1 %v3861_v12  ;;  %v3928_v0 = vld [vmem:[#allocation16 + $0x4b8] ss:$24 sps:$4 sm:$0xff]   ;;  %v3939_v12 = vld [vmem:[#allocation16 + $0x1f4] ss:$24 sps:$4 sm:$0xff]  }
 0x16e   : > { %2686 = vmatprep.subr.bf16.mxu0 %v3858_v9  ;;  %v3936_v9 = vld [vmem:[#allocation16 + $0x4ec] ss:$24 sps:$4 sm:$0xff]  }
 0x170   : > { %2728 = vmatpush1.bf16.msra.mxu1 %v3859_v11  ;;  %v3937_v11 = vld [vmem:[#allocation16 + $0x1f0] ss:$24 sps:$4 sm:$0xff]  }
 0x171   : > { %2687 = vmatpush1.bf16.msra.mxu0 %v3856_v10  ;;  %2729 = vmatprep.subr.bf16.mxu1 %v3867_v18  ;;  %v3934_v10 = vld [vmem:[#allocation16 + $0x4e8] ss:$24 sps:$4 sm:$0xff]   ;;  %v3945_v18 = vld [vmem:[#allocation16 + $0x224] ss:$24 sps:$4 sm:$0xff]  }
 0x172   : > { %2688 = vmatprep.subr.bf16.mxu0 %v3864_v17  ;;  %v3942_v17 = vld [vmem:[#allocation16 + $0x51c] ss:$24 sps:$4 sm:$0xff]  }
 0x174   : > { %2730 = vmatpush1.bf16.msra.mxu1 %v3865_v20  ;;  %v3943_v20 = vld [vmem:[#allocation16 + $0x220] ss:$24 sps:$4 sm:$0xff]  }
 0x175   : > { %2689 = vmatpush1.bf16.msra.mxu0 %v3862_v19  ;;  %2731 = vmatprep.subr.bf16.mxu1 %v3873_v22  ;;  %v3940_v19 = vld [vmem:[#allocation16 + $0x518] ss:$24 sps:$4 sm:$0xff]   ;;  %v3951_v22 = vld [vmem:[#allocation16 + $0x254] ss:$24 sps:$4 sm:$0xff]  }
 0x176   : > { %2690 = vmatprep.subr.bf16.mxu0 %v3870_v21  ;;  %v3948_v21 = vld [vmem:[#allocation16 + $0x54c] ss:$24 sps:$4 sm:$0xff]  }
 0x178   : > { %2732 = vmatpush1.bf16.msra.mxu1 %v3871_v26  ;;  %v3949_v26 = vld [vmem:[#allocation16 + $0x250] ss:$24 sps:$4 sm:$0xff]  }
 0x179   : > { %2691 = vmatpush1.bf16.msra.mxu0 %v3868_v24  ;;  %2742 = vmatprep.subr.bf16.mxu1 %v3876_v27  ;;  %v3946_v24 = vld [vmem:[#allocation16 + $0x548] ss:$24 sps:$4 sm:$0xff]   ;;  %v3954_v27 = vld [vmem:[#allocation16 + $0x57c] ss:$24 sps:$4 sm:$0xff]  }
 0x17a   : > { %2824 = vmatprep.subr.bf16.mxu0 %v3879_v28  ;;  %v3957_v28 = vld [vmem:[#allocation16 + $0x284] ss:$24 sps:$4 sm:$0xff]  }
 0x17b   : > { %2734 = vmatmul.mubr.bf16.vlgmr.msra.gmra.mrb[4].mxu1 %v4732_v61 }
 0x17c   : > { %2693 = vmatmul.mubr.bf16.vlgmr.msra.gmra.mrb[0].mxu0 %v4760_v30  ;;  %2743 = vmatpush1.bf16.msra.mxu1 %v3874_v13  ;;  %v3952_v13 = vld [vmem:[#allocation16 + $0x578] ss:$24 sps:$4 sm:$0xff]  }
 0x17d   : > { %2825 = vmatpush1.bf16.msra.mxu0 %v3877_v32  ;;  %2744 = vmatprep.subr.bf16.mxu1 %v3882_v33  ;;  %v3955_v32 = vld [vmem:[#allocation16 + $0x280] ss:$24 sps:$4 sm:$0xff]   ;;  %v3960_v33 = vld [vmem:[#allocation16 + $0x5ac] ss:$24 sps:$4 sm:$0xff]  }
 0x17e   : > { %2826 = vmatprep.subr.bf16.mxu0 %v3885_v8  ;;  %2774 = vmatprep.mubr.bf16.mxu1 %v4720_v37  ;;  %v3963_v8 = vld [vmem:[#allocation16 + $0x2b4] ss:$24 sps:$4 sm:$0xff]  }
 0x17f   : > { %2856 = vmatprep.mubr.bf16.mxu0 %v4718_v36  ;;  %v3901_v36 = vld [vmem:[#allocation16 + $0xd0] ss:$24 sps:$4 sm:$0xff]  }
 0x180   : > { %2745 = vmatpush1.bf16.msra.mxu1 %v3880_v35  ;;  %v3958_v35 = vld [vmem:[#allocation16 + $0x5a8] ss:$24 sps:$4 sm:$0xff]  }
 0x181   : > { %2827 = vmatpush1.bf16.msra.mxu0 %v3883_v38  ;;  %2746 = vmatprep.subr.bf16.mxu1 %v3888_v39  ;;  %v3961_v38 = vld [vmem:[#allocation16 + $0x2b0] ss:$24 sps:$4 sm:$0xff]   ;;  %v3966_v39 = vld [vmem:[#allocation16 + $0x5dc] ss:$24 sps:$4 sm:$0xff]  }
 0x182   : > { %2828 = vmatprep.subr.bf16.mxu0 %v3891_v40  ;;  %v3969_v40 = vld [vmem:[#allocation16 + $0x2e4] ss:$24 sps:$4 sm:$0xff]  }
 0x184   : > { %2747 = vmatpush1.bf16.msra.mxu1 %v3886_v34  ;;  %v3964_v34 = vld [vmem:[#allocation16 + $0x5d8] ss:$24 sps:$4 sm:$0xff]  }
 0x185   : > { %2829 = vmatpush1.bf16.msra.mxu0 %v3889_v42  ;;  %2748 = vmatprep.subr.bf16.mxu1 %v3894_v43  ;;  %v3967_v42 = vld [vmem:[#allocation16 + $0x2e0] ss:$24 sps:$4 sm:$0xff]   ;;  %v3972_v43 = vld [vmem:[#allocation16 + $0x60c] ss:$24 sps:$4 sm:$0xff]  }
 0x186   : > { %2830 = vmatprep.subr.bf16.mxu0 %v3897_v44  ;;  %v3975_v44 = vld [vmem:[#allocation16 + $0x314] ss:$24 sps:$4 sm:$0xff]  }
 0x188   : > { %2749 = vmatpush1.bf16.msra.mxu1 %v3892_v45  ;;  %v3970_v45 = vld [vmem:[#allocation16 + $0x608] ss:$24 sps:$4 sm:$0xff]  }
 0x189   : > { %2831 = vmatpush1.bf16.msra.mxu0 %v3895_v15  ;;  %2750 = vmatprep.subr.bf16.mxu1 %v3900_v46  ;;  %v3973_v15 = vld [vmem:[#allocation16 + $0x310] ss:$24 sps:$4 sm:$0xff]   ;;  %v3978_v46 = vld [vmem:[#allocation16 + $0x63c] ss:$24 sps:$4 sm:$0xff]  }
 0x18a   : > { %2832 = vmatprep.subr.bf16.mxu0 %v3903_v47  ;;  %v3981_v47 = vld [vmem:[#allocation16 + $0x344] ss:$24 sps:$4 sm:$0xff]  }
 0x18c   : > { %2751 = vmatpush1.bf16.msra.mxu1 %v3898_v41  ;;  %v3976_v41 = vld [vmem:[#allocation16 + $0x638] ss:$24 sps:$4 sm:$0xff]  }
 0x18d   : > { %2833 = vmatpush1.bf16.msra.mxu0 %v3901_v36  ;;  %2752 = vmatprep.subr.bf16.mxu1 %v3906_v48  ;;  %v3979_v36 = vld [vmem:[#allocation16 + $0x340] ss:$24 sps:$4 sm:$0xff]   ;;  %v3984_v48 = vld [vmem:[#allocation16 + $0x66c] ss:$24 sps:$4 sm:$0xff]  }
 0x18e   : > { %2834 = vmatprep.subr.bf16.mxu0 %v3909_v16  ;;  %v3987_v16 = vld [vmem:[#allocation16 + $0x374] ss:$24 sps:$4 sm:$0xff]  }
 0x190   : > { %2753 = vmatpush1.bf16.msra.mxu1 %v3904_v50  ;;  %v3982_v50 = vld [vmem:[#allocation16 + $0x668] ss:$24 sps:$4 sm:$0xff]  }
 0x191   : > { %2835 = vmatpush1.bf16.msra.mxu0 %v3907_v51  ;;  %2754 = vmatprep.subr.bf16.mxu1 %v3912_v52  ;;  %v3985_v51 = vld [vmem:[#allocation16 + $0x370] ss:$24 sps:$4 sm:$0xff]   ;;  %v3990_v52 = vld [vmem:[#allocation16 + $0x69c] ss:$24 sps:$4 sm:$0xff]  }
 0x192   : > { %2836 = vmatprep.subr.bf16.mxu0 %v3915_v53  ;;  %v3988_v53 = vld [vmem:[#allocation16 + $0x698] ss:$24 sps:$4 sm:$0xff]  }
 0x194   : > { %2755 = vmatpush1.bf16.msra.mxu1 %v3910_v54  ;;  %v3991_v54 = vld [vmem:[#allocation16 + $0x3a0] ss:$24 sps:$4 sm:$0xff]  }
 0x195   : > { %2837 = vmatpush1.bf16.msra.mxu0 %v3913_v55  ;;  %2756 = vmatprep.subr.bf16.mxu1 %v3918_v56  ;;  %v3996_v55 = vld [vmem:[#allocation16 + $0x6cc] ss:$24 sps:$4 sm:$0xff]  }
 0x196   : > { %2838 = vmatprep.subr.bf16.mxu0 %v3921_v57  ;;  %v3999_v56 = vld [vmem:[#allocation16 + $0x3d4] ss:$24 sps:$4 sm:$0xff]   ;;  %v3994_v57 = vld [vmem:[#allocation16 + $0x6c8] ss:$24 sps:$4 sm:$0xff]  }
 0x198   : > { %2757 = vmatpush1.bf16.msra.mxu1 %v3916_v58  ;;  %v4002_v58 = vld [vmem:[#allocation16 + $0x6fc] ss:$24 sps:$4 sm:$0xff]  }
 0x199   : > { %2839 = vmatpush1.bf16.msra.mxu0 %v3919_v59  ;;  %2758 = vmatprep.subr.bf16.mxu1 %v3924_v60  ;;  %v4005_v59 = vld [vmem:[#allocation16 + $0x404] ss:$24 sps:$4 sm:$0xff]   ;;  %v4000_v60 = vld [vmem:[#allocation16 + $0x6f8] ss:$24 sps:$4 sm:$0xff]  }
 0x19a   : > { %2840 = vmatprep.subr.bf16.mxu0 %v3927_v62  ;;  %v4003_v62 = vld [vmem:[#allocation16 + $0x400] ss:$24 sps:$4 sm:$0xff]  }
 0x19c   : > { %2759 = vmatpush1.bf16.msra.mxu1 %v3922_v63  ;;  %v4008_v63 = vld [vmem:[#allocation16 + $0x72c] ss:$24 sps:$4 sm:$0xff]  }
 0x19d   : > { %2841 = vmatpush1.bf16.msra.mxu0 %v3925_v4  ;;  %2760 = vmatprep.subr.bf16.mxu1 %v3930_v5  ;;  %v4011_v4 = vld [vmem:[#allocation16 + $0x434] ss:$24 sps:$4 sm:$0xff]   ;;  %v4006_v5 = vld [vmem:[#allocation16 + $0x728] ss:$24 sps:$4 sm:$0xff]  }
 0x19e   : > { %2842 = vmatprep.subr.bf16.mxu0 %v3933_v6  ;;  %v4009_v6 = vld [vmem:[#allocation16 + $0x430] ss:$24 sps:$4 sm:$0xff]  }
 0x1a0   : > { %2761 = vmatpush1.bf16.msra.mxu1 %v3928_v0  ;;  %v4014_v0 = vld [vmem:[#allocation16 + $0x75c] ss:$24 sps:$4 sm:$0xff]  }
 0x1a1   : > { %2843 = vmatpush1.bf16.msra.mxu0 %v3931_v2  ;;  %2762 = vmatprep.subr.bf16.mxu1 %v3936_v9  ;;  %v4017_v2 = vld [vmem:[#allocation16 + $0x464] ss:$24 sps:$4 sm:$0xff]   ;;  %v4012_v9 = vld [vmem:[#allocation16 + $0x758] ss:$24 sps:$4 sm:$0xff]  }
 0x1a2   : > { %2844 = vmatprep.subr.bf16.mxu0 %v3939_v12  ;;  %v4015_v12 = vld [vmem:[#allocation16 + $0x460] ss:$24 sps:$4 sm:$0xff]  }
 0x1a4   : > { %2763 = vmatpush1.bf16.msra.mxu1 %v3934_v10  ;;  %v4020_v10 = vld [vmem:[#allocation16 + $0x78c] ss:$24 sps:$4 sm:$0xff]  }
 0x1a5   : > { %2845 = vmatpush1.bf16.msra.mxu0 %v3937_v11  ;;  %2764 = vmatprep.subr.bf16.mxu1 %v3942_v17  ;;  %v4023_v11 = vld [vmem:[#allocation16 + $0x494] ss:$24 sps:$4 sm:$0xff]   ;;  %v4018_v17 = vld [vmem:[#allocation16 + $0x788] ss:$24 sps:$4 sm:$0xff]  }
 0x1a6   : > { %2846 = vmatprep.subr.bf16.mxu0 %v3945_v18  ;;  %v4021_v18 = vld [vmem:[#allocation16 + $0x490] ss:$24 sps:$4 sm:$0xff]  }
 0x1a8   : > { %2765 = vmatpush1.bf16.msra.mxu1 %v3940_v19  ;;  %v4026_v19 = vld [vmem:[#allocation16 + $0x7bc] ss:$24 sps:$4 sm:$0xff]  }
 0x1a9   : > { %2847 = vmatpush1.bf16.msra.mxu0 %v3943_v20  ;;  %2766 = vmatprep.subr.bf16.mxu1 %v3948_v21  ;;  %v4029_v20 = vld [vmem:[#allocation16 + $0x4c4] ss:$24 sps:$4 sm:$0xff]   ;;  %v4024_v21 = vld [vmem:[#allocation16 + $0x7b8] ss:$24 sps:$4 sm:$0xff]  }
 0x1aa   : > { %2848 = vmatprep.subr.bf16.mxu0 %v3951_v22  ;;  %v4027_v22 = vld [vmem:[#allocation16 + $0x4c0] ss:$24 sps:$4 sm:$0xff]  }
 0x1ac   : > { %2767 = vmatpush1.bf16.msra.mxu1 %v3946_v24  ;;  %v4032_v24 = vld [vmem:[#allocation16 + $0x7ec] ss:$24 sps:$4 sm:$0xff]  }
 0x1ad   : > { %2849 = vmatpush1.bf16.msra.mxu0 %v3949_v26  ;;  %2768 = vmatprep.subr.bf16.mxu1 %v3954_v27  ;;  %v4035_v26 = vld [vmem:[#allocation16 + $0x4f4] ss:$24 sps:$4 sm:$0xff]   ;;  %v4030_v27 = vld [vmem:[#allocation16 + $0x7e8] ss:$24 sps:$4 sm:$0xff]  }
 0x1ae   : > { %2850 = vmatprep.subr.bf16.mxu0 %v3957_v28  ;;  %v4033_v28 = vld [vmem:[#allocation16 + $0x4f0] ss:$24 sps:$4 sm:$0xff]  }
 0x1b0   : > { %2769 = vmatpush1.bf16.msra.mxu1 %v3952_v13  ;;  %v4038_v13 = vld [vmem:[#allocation16 + $0x81c] ss:$24 sps:$4 sm:$0xff]  }
 0x1b1   : > { %2851 = vmatpush1.bf16.msra.mxu0 %v3955_v32  ;;  %2770 = vmatprep.subr.bf16.mxu1 %v3960_v33  ;;  %v4041_v32 = vld [vmem:[#allocation16 + $0x524] ss:$24 sps:$4 sm:$0xff]   ;;  %v4036_v33 = vld [vmem:[#allocation16 + $0x818] ss:$24 sps:$4 sm:$0xff]  }
 0x1b2   : > { %2852 = vmatprep.subr.bf16.mxu0 %v3963_v8  ;;  %v4039_v8 = vld [vmem:[#allocation16 + $0x520] ss:$24 sps:$4 sm:$0xff]  }
 0x1b4   : > { %2771 = vmatpush1.bf16.msra.mxu1 %v3958_v35  ;;  %v4044_v35 = vld [vmem:[#allocation16 + $0x84c] ss:$24 sps:$4 sm:$0xff]  }
 0x1b5   : > { %2853 = vmatpush1.bf16.msra.mxu0 %v3961_v38  ;;  %2772 = vmatprep.subr.bf16.mxu1 %v3966_v39  ;;  %v4047_v38 = vld [vmem:[#allocation16 + $0x554] ss:$24 sps:$4 sm:$0xff]   ;;  %v4042_v39 = vld [vmem:[#allocation16 + $0x848] ss:$24 sps:$4 sm:$0xff]  }
 0x1b6   : > { %2854 = vmatprep.subr.bf16.mxu0 %v3969_v40  ;;  %v4045_v40 = vld [vmem:[#allocation16 + $0x550] ss:$24 sps:$4 sm:$0xff]  }
 0x1b8   : > { %2773 = vmatpush1.bf16.msra.mxu1 %v3964_v34  ;;  %v4050_v34 = vld [vmem:[#allocation16 + $0x87c] ss:$24 sps:$4 sm:$0xff]  }
 0x1b9   : > { %2855 = vmatpush1.bf16.msra.mxu0 %v3967_v42  ;;  %2783 = vmatprep.subr.bf16.mxu1 %v3972_v43  ;;  %v4053_v42 = vld [vmem:[#allocation16 + $0x584] ss:$24 sps:$4 sm:$0xff]   ;;  %v4048_v43 = vld [vmem:[#allocation16 + $0x878] ss:$24 sps:$4 sm:$0xff]  }
 0x1ba   : > { %2865 = vmatprep.subr.bf16.mxu0 %v3975_v44  ;;  %v4051_v44 = vld [vmem:[#allocation16 + $0x580] ss:$24 sps:$4 sm:$0xff]  }
 0x1bb   : > { %2775 = vmatmul.mubr.bf16.vlgmr.msra.gmra.mrb[4].mxu1 %v4734_v14 }
 0x1bc   : > { %2857 = vmatmul.mubr.bf16.vlgmr.msra.gmra.mrb[4].mxu0 %v4732_v61  ;;  %2784 = vmatpush1.bf16.msra.mxu1 %v3970_v45  ;;  %v3993_v61 = vld [vmem:[#allocation16 + $0x3a4] ss:$24 sps:$4 sm:$0xff]  }
 0x1bd   : > { %2866 = vmatpush1.bf16.msra.mxu0 %v3973_v15  ;;  %2785 = vmatprep.subr.bf16.mxu1 %v3978_v46  ;;  %v4056_v45 = vld [vmem:[#allocation16 + $0x8ac] ss:$24 sps:$4 sm:$0xff]   ;;  %v4054_v46 = vld [vmem:[#allocation16 + $0x8a8] ss:$24 sps:$4 sm:$0xff]  }
 0x1be   : > { %2867 = vmatprep.subr.bf16.mxu0 %v3981_v47  ;;  %2815 = vmatprep.mubr.bf16.mxu1 %v4755_v49  ;;  %v4059_v15 = vld [vmem:[#allocation16 + $0x5b4] ss:$24 sps:$4 sm:$0xff]   ;;  %v4057_v47 = vld [vmem:[#allocation16 + $0x5b0] ss:$24 sps:$4 sm:$0xff]  }
 0x1bf   : > { %2897 = vmatprep.mubr.bf16.mxu0 %v4720_v37  ;;  %v3997_v37 = vld [vmem:[#allocation16 + $0x3d0] ss:$24 sps:$4 sm:$0xff]  }
 0x1c0   : > { %2786 = vmatpush1.bf16.msra.mxu1 %v3976_v41  ;;  %v4062_v41 = vld [vmem:[#allocation16 + $0x8dc] ss:$24 sps:$4 sm:$0xff]  }
 0x1c1   : > { %2868 = vmatpush1.bf16.msra.mxu0 %v3979_v36  ;;  %2787 = vmatprep.subr.bf16.mxu1 %v3984_v48  ;;  %v4065_v36 = vld [vmem:[#allocation16 + $0x5e4] ss:$24 sps:$4 sm:$0xff]   ;;  %v4060_v48 = vld [vmem:[#allocation16 + $0x8d8] ss:$24 sps:$4 sm:$0xff]  }
 0x1c2   : > { %2869 = vmatprep.subr.bf16.mxu0 %v3987_v16  ;;  %v4063_v16 = vld [vmem:[#allocation16 + $0x5e0] ss:$24 sps:$4 sm:$0xff]  }
 0x1c4   : > { %2788 = vmatpush1.bf16.msra.mxu1 %v3982_v50  ;;  %v4068_v50 = vld [vmem:[#allocation16 + $0x614] ss:$24 sps:$4 sm:$0xff]  }
 0x1c5   : > { %2870 = vmatpush1.bf16.msra.mxu0 %v3985_v51  ;;  %2789 = vmatprep.subr.bf16.mxu1 %v3990_v52  ;;  %v4066_v51 = vld [vmem:[#allocation16 + $0x610] ss:$24 sps:$4 sm:$0xff]   ;;  %v4071_v52 = vld [vmem:[#allocation16 + $0x644] ss:$24 sps:$4 sm:$0xff]  }
 0x1c6   : > { %2871 = vmatprep.subr.bf16.mxu0 %v3993_v61  ;;  %v4069_v61 = vld [vmem:[#allocation16 + $0x640] ss:$24 sps:$4 sm:$0xff]  }
 0x1c8   : > { %2790 = vmatpush1.bf16.msra.mxu1 %v3988_v53  ;;  %v4074_v53 = vld [vmem:[#allocation16 + $0x674] ss:$24 sps:$4 sm:$0xff]  }
 0x1c9   : > { %2872 = vmatpush1.bf16.msra.mxu0 %v3991_v54  ;;  %2791 = vmatprep.subr.bf16.mxu1 %v3996_v55  ;;  %v4072_v54 = vld [vmem:[#allocation16 + $0x670] ss:$24 sps:$4 sm:$0xff]   ;;  %v4077_v55 = vld [vmem:[#allocation16 + $0x6a4] ss:$24 sps:$4 sm:$0xff]  }
 0x1ca   : > { %2873 = vmatprep.subr.bf16.mxu0 %v3999_v56  ;;  %v4075_v56 = vld [vmem:[#allocation16 + $0x6a0] ss:$24 sps:$4 sm:$0xff]  }
 0x1cc   : > { %2792 = vmatpush1.bf16.msra.mxu1 %v3994_v57  ;;  %v4080_v57 = vld [vmem:[#allocation16 + $0x6d4] ss:$24 sps:$4 sm:$0xff]  }
 0x1cd   : > { %2874 = vmatpush1.bf16.msra.mxu0 %v3997_v37  ;;  %2793 = vmatprep.subr.bf16.mxu1 %v4002_v58  ;;  %v4078_v37 = vld [vmem:[#allocation16 + $0x6d0] ss:$24 sps:$4 sm:$0xff]   ;;  %v4083_v58 = vld [vmem:[#allocation16 + $0x704] ss:$24 sps:$4 sm:$0xff]  }
 0x1ce   : > { %2875 = vmatprep.subr.bf16.mxu0 %v4005_v59  ;;  %v4086_v59 = vld [vmem:[#allocation16 + $0x734] ss:$24 sps:$4 sm:$0xff]  }
 0x1d0   : > { %2794 = vmatpush1.bf16.msra.mxu1 %v4000_v60 }
 0x1d1   : > { %2876 = vmatpush1.bf16.msra.mxu0 %v4003_v62  ;;  %2795 = vmatprep.subr.bf16.mxu1 %v4008_v63  ;;  %v4084_v62 = vld [vmem:[#allocation16 + $0x730] ss:$24 sps:$4 sm:$0xff]  }
 0x1d2   : > { %2877 = vmatprep.subr.bf16.mxu0 %v4011_v4  ;;  %v4089_v4 = vld [vmem:[#allocation16 + $0x764] ss:$24 sps:$4 sm:$0xff]  }
 0x1d4   : > { %2796 = vmatpush1.bf16.msra.mxu1 %v4006_v5 }
 0x1d5   : > { %2878 = vmatpush1.bf16.msra.mxu0 %v4009_v6  ;;  %2797 = vmatprep.subr.bf16.mxu1 %v4014_v0  ;;  %v4087_v6 = vld [vmem:[#allocation16 + $0x760] ss:$24 sps:$4 sm:$0xff]   ;;  %v4092_v0 = vld [vmem:[#allocation16 + $0x794] ss:$24 sps:$4 sm:$0xff]  }
 0x1d6   : > { %2879 = vmatprep.subr.bf16.mxu0 %v4017_v2  ;;  %v4090_v2 = vld [vmem:[#allocation16 + $0x790] ss:$24 sps:$4 sm:$0xff]  }
 0x1d8   : > { %2798 = vmatpush1.bf16.msra.mxu1 %v4012_v9  ;;  %v4095_v9 = vld [vmem:[#allocation16 + $0x7c4] ss:$24 sps:$4 sm:$0xff]  }
 0x1d9   : > { %2880 = vmatpush1.bf16.msra.mxu0 %v4015_v12  ;;  %2799 = vmatprep.subr.bf16.mxu1 %v4020_v10  ;;  %v4093_v12 = vld [vmem:[#allocation16 + $0x7c0] ss:$24 sps:$4 sm:$0xff]   ;;  %v4098_v10 = vld [vmem:[#allocation16 + $0x7f4] ss:$24 sps:$4 sm:$0xff]  }
 0x1da   : > { %2881 = vmatprep.subr.bf16.mxu0 %v4023_v11  ;;  %v4096_v11 = vld [vmem:[#allocation16 + $0x7f0] ss:$24 sps:$4 sm:$0xff]  }
 0x1dc   : > { %2800 = vmatpush1.bf16.msra.mxu1 %v4018_v17  ;;  %v4101_v17 = vld [vmem:[#allocation16 + $0x824] ss:$24 sps:$4 sm:$0xff]  }
 0x1dd   : > { %2882 = vmatpush1.bf16.msra.mxu0 %v4021_v18  ;;  %2801 = vmatprep.subr.bf16.mxu1 %v4026_v19  ;;  %v4099_v18 = vld [vmem:[#allocation16 + $0x820] ss:$24 sps:$4 sm:$0xff]   ;;  %v4104_v19 = vld [vmem:[#allocation16 + $0x854] ss:$24 sps:$4 sm:$0xff]  }
 0x1de   : > { %2883 = vmatprep.subr.bf16.mxu0 %v4029_v20  ;;  %v4102_v20 = vld [vmem:[#allocation16 + $0x850] ss:$24 sps:$4 sm:$0xff]  }
 0x1e0   : > { %2802 = vmatpush1.bf16.msra.mxu1 %v4024_v21  ;;  %v4107_v21 = vld [vmem:[#allocation16 + $0x884] ss:$24 sps:$4 sm:$0xff]  }
 0x1e1   : > { %2884 = vmatpush1.bf16.msra.mxu0 %v4027_v22  ;;  %2803 = vmatprep.subr.bf16.mxu1 %v4032_v24  ;;  %v4105_v22 = vld [vmem:[#allocation16 + $0x880] ss:$24 sps:$4 sm:$0xff]   ;;  %v4110_v24 = vld [vmem:[#allocation16 + $0x8b4] ss:$24 sps:$4 sm:$0xff]  }
 0x1e2   : > { %2885 = vmatprep.subr.bf16.mxu0 %v4035_v26  ;;  %v4108_v26 = vld [vmem:[#allocation16 + $0x8b0] ss:$24 sps:$4 sm:$0xff]  }
 0x1e4   : > { %2804 = vmatpush1.bf16.msra.mxu1 %v4030_v27  ;;  %v4113_v27 = vld [vmem:[#allocation16 + $0x8e4] ss:$24 sps:$4 sm:$0xff]  }
 0x1e5   : > { %2886 = vmatpush1.bf16.msra.mxu0 %v4033_v28  ;;  %2805 = vmatprep.subr.bf16.mxu1 %v4038_v13  ;;  %v4111_v28 = vld [vmem:[#allocation16 + $0x8e0] ss:$24 sps:$4 sm:$0xff]  }
 0x1e6   : > { %2887 = vmatprep.subr.bf16.mxu0 %v4041_v32  ;;  %v1106_v13 = vld [vmem:[#allocation18] sm:$0x3f] }
 0x1e7   : > { %v1111_v32 = vrot.slane %v1106_v13, %v4713_v29 }
 0x1e8   : > { %2806 = vmatpush1.bf16.msra.mxu1 %v4036_v33  ;;  %v1115_v33 = vrot.slane %v1106_v13, %v4695_v3 }
 0x1e9   : > { %2888 = vmatpush1.bf16.msra.mxu0 %v4039_v8  ;;  %2807 = vmatprep.subr.bf16.mxu1 %v4044_v35  ;;  %v2953_v35 = vld [vmem:[#allocation19] sm:$0x3f] }
 0x1ea   : > { %2889 = vmatprep.subr.bf16.mxu0 %v4047_v38 }
 0x1ec   : > { %2808 = vmatpush1.bf16.msra.mxu1 %v4042_v39 }
 0x1ed   : > { %2890 = vmatpush1.bf16.msra.mxu0 %v4045_v40  ;;  %2809 = vmatprep.subr.bf16.mxu1 %v4050_v34  ;;  %v2958_v34 = vrot.slane %v2953_v35, %v4713_v29  ;;  %v1123_v29 = vrot.slane %v1106_v13, %v4698_v7 }
 0x1ee   : > { %2891 = vmatprep.subr.bf16.mxu0 %v4053_v42 }
 0x1f0   : > { %2810 = vmatpush1.bf16.msra.mxu1 %v4048_v43 }
 0x1f1   : > { %2892 = vmatpush1.bf16.msra.mxu0 %v4051_v44  ;;  %2811 = vmatprep.subr.bf16.mxu1 %v4056_v45  ;;  %v2962_v44 = vrot.slane %v2953_v35, %v4695_v3  ;;  %v2966_v3 = vrot.slane %v2953_v35, %v4716_v31 }
 0x1f2   : > { %2893 = vmatprep.subr.bf16.mxu0 %v4059_v15 }
 0x1f4   : > { %2812 = vmatpush1.bf16.msra.mxu1 %v4054_v46 }
 0x1f5   : > { %2894 = vmatpush1.bf16.msra.mxu0 %v4057_v47  ;;  %2813 = vmatprep.subr.bf16.mxu1 %v4062_v41 }
 0x1f6   : > { %2895 = vmatprep.subr.bf16.mxu0 %v4065_v36 }
 0x1f8   : > { %2814 = vmatpush1.bf16.msra.mxu1 %v4060_v48 }
 0x1f9   : > { %2896 = vmatpush1.bf16.msra.mxu0 %v4063_v16 }
 0x1fa   : > { %2906 = vmatprep.subr.bf16.mxu0 %v4068_v50  ;;  %v1119_v50 = vrot.slane %v1106_v13, %v4716_v31  ;;  %v1131_v31 = vrot.slane %v1106_v13, %v4740_v25 }
 0x1fb   : > { %2816 = vmatmul.mubr.bf16.vlgmr.msra.gmra.mrb[4].mxu1 %v4760_v30 }
 0x1fc   : > { %2898 = vmatmul.mubr.bf16.vlgmr.msra.gmra.mrb[4].mxu0 %v4734_v14  ;;  %v4081_v14 = vld [vmem:[#allocation16 + $0x700] ss:$24 sps:$4 sm:$0xff]  }
 0x1fd   : > { %2907 = vmatpush1.bf16.msra.mxu0 %v4066_v51  ;;  %2938 = vmatprep.mubr.bf16.mxu0 %v4755_v49 }
 0x1fe   : > { %2908 = vmatprep.subr.bf16.mxu0 %v4071_v52 }
 0x201   : > { %2909 = vmatpush1.bf16.msra.mxu0 %v4069_v61 }
 0x202   : > { %2910 = vmatprep.subr.bf16.mxu0 %v4074_v53 }
 0x205   : > { %2911 = vmatpush1.bf16.msra.mxu0 %v4072_v54  ;;  %v2970_v54 = vrot.slane %v2953_v35, %v4698_v7  ;;  %v2974_v7 = vrot.slane %v2953_v35, %v4743_v23 }
 0x206   : > { %2912 = vmatprep.subr.bf16.mxu0 %v4077_v55 }
 0x209   : > { %2913 = vmatpush1.bf16.msra.mxu0 %v4075_v56 }
 0x20a   : > { %2914 = vmatprep.subr.bf16.mxu0 %v4080_v57 }
 0x20d   : > { %2915 = vmatpush1.bf16.msra.mxu0 %v4078_v37 }
 0x20e   : > { %2916 = vmatprep.subr.bf16.mxu0 %v4083_v58  ;;  %v2612_v60 = vpop.f32.mrb[0].mxu1 }
 0x20f   : > { %v2614_v49 = vpop.f32.mrb[1].mxu1  ;;  %v2613_v8 = vadd.f32 %v2612_v60, %v1111_v32 }
 0x210   : > { %v2616_v63 = vpop.f32.mrb[2].mxu1  ;;  %v2615_v38 = vadd.f32 %v2614_v49, %v1115_v33 }
 0x211   : > { %2917 = vmatpush1.bf16.msra.mxu0 %v4081_v14  ;;  %v2617_v5 = vpop.f32.mrb[3].mxu1  ;;  %v1127_v63 = vrot.slane %v1106_v13, %v4743_v23 }
 0x212   : > { %2918 = vmatprep.subr.bf16.mxu0 %v4086_v59 }
 0x215   : > { %2919 = vmatpush1.bf16.msra.mxu0 %v4084_v62 }
 0x216   : > { %2920 = vmatprep.subr.bf16.mxu0 %v4089_v4 }
 0x219   : > { %2921 = vmatpush1.bf16.msra.mxu0 %v4087_v6 }
 0x21a   : > { %2922 = vmatprep.subr.bf16.mxu0 %v4092_v0 }
 0x21d   : > { %2923 = vmatpush1.bf16.msra.mxu0 %v4090_v2 }
 0x21e   : > { %2924 = vmatprep.subr.bf16.mxu0 %v4095_v9  ;;  %v2978_v9 = vrot.slane %v2953_v35, %v4740_v25 }
 0x221   : > { %2925 = vmatpush1.bf16.msra.mxu0 %v4093_v12 }
 0x222   : > { %2926 = vmatprep.subr.bf16.mxu0 %v4098_v10 }
 0x225   : > { %2927 = vmatpush1.bf16.msra.mxu0 %v4096_v11 }
 0x226   : > { %2928 = vmatprep.subr.bf16.mxu0 %v4101_v17 }
 0x229   : > { %2929 = vmatpush1.bf16.msra.mxu0 %v4099_v18 }
 0x22a   : > { %2930 = vmatprep.subr.bf16.mxu0 %v4104_v19 }
 0x22d   : > { %2931 = vmatpush1.bf16.msra.mxu0 %v4102_v20 }
 0x22e   : > { %2932 = vmatprep.subr.bf16.mxu0 %v4107_v21 }
 0x231   : > { %2933 = vmatpush1.bf16.msra.mxu0 %v4105_v22 }
 0x232   : > { %2934 = vmatprep.subr.bf16.mxu0 %v4110_v24  ;;  %v3006_v24 = vstv %s3005_s11 }
 0x235   : > { %2935 = vmatpush1.bf16.msra.mxu0 %v4108_v26 }
 0x236   : > { %2936 = vmatprep.subr.bf16.mxu0 %v4113_v27 }
 0x239   : > { %2937 = vmatpush1.bf16.msra.mxu0 %v4111_v28 }
 0x23c   : > { %2939 = vmatmul.mubr.bf16.vlgmr.msra.gmra.mrb[4].mxu0 %v4760_v30 }
 0x24f   : > { %v2694_v39 = vpop.f32.mrb[0].mxu0 }
 0x250   : > { %v3553_v40 = vadd.f32 %v2694_v39, %v2613_v8  ;;  %v2696_v42 = vpop.f32.mrb[1].mxu0 }
 0x251   : > { %v3555_v43 = vadd.f32 %v2696_v42, %v2615_v38  ;;  %v2698_v45 = vpop.f32.mrb[2].mxu0 }
 0x252   : > { %v2947_v15 = vmax.f32 %v3553_v40, 0.0  ;;  %v2699_v46 = vpop.f32.mrb[3].mxu0 }
 0x253   : > { %v2948_v30 = vmax.f32 %v3555_v43, 0.0 }
 0x254   : > { %v2985_v47 = vmul.f32 %v2958_v34, %v2947_v15  ;;  %v4798_v40 = vmul.u32.u64.low 2863311531, %v4692_v1  ;;  %v4799_v34 = vmul.u32.u64.high 2863311531, %v4692_v1, %v4798_v40 }
 0x255   : > { %v2986_v41 = vmul.f32 %v2962_v44, %v2948_v30 }
 0x256   : > { %v2992_v36 = vsel %vm2991_vm4, %v2985_v47, 0.0  ;;  %v3022_v42 = vshrl.u32 %v4799_v34, 1 }
 0x257   : > { %v2993_v48 = vsel %vm2991_vm4, %v2986_v41, 0.0  ;;  %v3013_v41 = vld [vmem:[%s4851_s7] sm:$0x3f] }
 0x258   : > { %v2994_v16 = vadd.f32 %v2993_v48, %v2992_v36  ;;  %v3023_v46 = vmul.u32 3, %v3022_v42  ;;  %vm3050_vm9 = vcmp.eq.s32.totalorder %v3013_v41, 1  ;;  %vm3049_vm10 = vcmp.eq.s32.totalorder %v3013_v41, 0 }
 0x25a   : > { %v3024_v47 = vsub.s32 %v4692_v1, %v3023_v46 }
 0x25c   : > { %vm3027_vm6 = vcmp.ne.s32.totalorder %v3024_v47, 0  ;;  %vm3028_vm7 = vcmp.lt.s32.totalorder %v3024_v47, 0  ;;  %v3030_v36 = vadd.s32 3, %v3024_v47 }
 0x25d   : > { %vm3029_vm8 = vmand %vm3028_vm7, %vm3027_vm6 }
 0x2ce   : > { %v2817_v51 = vpop.f32.mrb[4].mxu1 }
 0x2cf   : > { %v3556_v52 = vadd.f32 %v2817_v51, %v1119_v50  ;;  %v2819_v61 = vpop.f32.mrb[5].mxu1 }
 0x2d0   : > { %v3557_v53 = vadd.f32 %v2819_v61, %v1123_v29  ;;  %v2821_v55 = vpop.f32.mrb[6].mxu1 }
 0x2d1   : > { %v2949_v56 = vmax.f32 %v3556_v52, 0.0  ;;  %v2822_v57 = vpop.f32.mrb[7].mxu1 }
 0x2d2   : > { %v2950_v37 = vmax.f32 %v3557_v53, 0.0 }
 0x2d3   : > { %v2987_v58 = vmul.f32 %v2966_v3, %v2949_v56 }
 0x2d4   : > { %v2988_v14 = vmul.f32 %v2970_v54, %v2950_v37  ;;  %v3053_v37 = vld [vmem:[#allocation6] sm:$0x1] }
 0x2d5   : > { %v2995_v59 = vsel %vm2991_vm4, %v2987_v58, 0.0 }
 0x2d6   : > { %v2996_v60 = vadd.f32 %v2995_v59, %v2994_v16  ;;  %v2997_v49 = vsel %vm2991_vm4, %v2988_v14, 0.0  ;;  %v3031_v16 = vsel %vm3029_vm8, %v3030_v36, %v3024_v47 }
 0x2d7   : > { %vm3032_vm11 = vcmp.eq.s32.totalorder %v3031_v16, 0 }
 0x2d8   : > { %v2998_v62 = vadd.f32 %v2997_v49, %v2996_v60 }
 0x30f   : > { %v2940_v4 = vpop.f32.mrb[4].mxu0 }
 0x310   : > { %v3558_v5 = vadd.f32 %v2940_v4, %v1127_v63  ;;  %v2942_v6 = vpop.f32.mrb[5].mxu0 }
 0x311   : > { %v3559_v0 = vadd.f32 %v2942_v6, %v1131_v31  ;;  %v2944_v2 = vpop.f32.mrb[6].mxu0 }
 0x312   : > { %v2951_v12 = vmax.f32 %v3558_v5, 0.0  ;;  %v2945_v10 = vpop.f32.mrb[7].mxu0 }
 0x313   : > { %v2952_v11 = vmax.f32 %v3559_v0, 0.0 }
 0x314   : > { %v2989_v17 = vmul.f32 %v2974_v7, %v2951_v12 }
 0x315   : > { %v2990_v18 = vmul.f32 %v2978_v9, %v2952_v11 }
 0x316   : > { %v2999_v19 = vsel %vm2991_vm4, %v2989_v17, 0.0 }
 0x317   : > { %v3000_v20 = vadd.f32 %v2999_v19, %v2998_v62  ;;  %v3001_v21 = vsel %vm2991_vm4, %v2990_v18, 0.0 }
 0x319   : > { %v3002_v22 = vadd.f32 %v3001_v21, %v3000_v20 }
 0x31b   : > { %3003 = vadd.xlane.f32.xlu0 %v3002_v22 }
 0x3a8   : > { %v3004_v23 = vpop.xlane.xlu0 %3003 }
 0x3a9   : > { %v3007_v26 = vadd.f32 %v3006_v24, %v3004_v23 }
 0x3ab   : > { %3009 = vst.msk [vmem:[%s4852_s8] sm:$0x3f] %vm3008_vm5, %v3007_v26  ;;  %3010 = vst.msk [vmem:[#allocation7] sm:$0x3f] %vm3008_vm5, %v3007_v26 }
 0x3b2   : > { %v3011_v25 = vld [vmem:[#allocation7 + $0x1] sm:$0x3f] }
 0x3b3   : > { %v3033_v27 = vmax.f32 %v3007_v26, %v3011_v25  ;;  %v3012_v28 = vld [vmem:[#allocation7 + $0x2] sm:$0x3f] }
 0x3b4   : > { %v3051_v29 = vsel %vm3050_vm9, %v3011_v25, %v3012_v28 }
 0x3b5   : > { %v3034_v13 = vmax.f32 %v3033_v27, %v3012_v28  ;;  %v3052_v52 = vsel %vm3049_vm10, %v3007_v26, %v3051_v29 }
 0x3b7   : > { %v3035_v32 = vsub.f32 %v3007_v26, %v3034_v13  ;;  %v3038_v33 = vsub.f32 %v3011_v25, %v3034_v13  ;;  %v3042_v8 = vsub.f32 %v3012_v28, %v3034_v13 }
 0x3b9   : > { %v3036_v35 = vmul.f32 1.442695, %v3035_v32  ;;  %v3039_v38 = vmul.f32 1.442695, %v3038_v33  ;;  %v3043_v39 = vmul.f32 1.442695, %v3042_v8 }
 0x3bb   : > { %4114 = vpow2.f32 %v3036_v35 }
 0x3bc   : > { %4116 = vpow2.f32 %v3039_v38 }
 0x3bd   : > { %4118 = vpow2.f32 %v3043_v39 }
 0x3c5   : > { %v4115_v43 = vpop.eup %4114 }
 0x3c6   : > { %v4117_v44 = vpop.eup %4116 }
 0x3c7   : > { %v3041_v45 = vadd.f32 %v4117_v44, %v4115_v43  ;;  %v4119_v15 = vpop.eup %4118 }
 0x3c9   : > { %v3045_v30 = vadd.f32 %v4119_v15, %v3041_v45 }
 0x3cb   : > { %4120 = vlog2.f32 %v3045_v30 }
 0x3d5   : > { %v4121_v48 = vpop.eup %4120 }
 0x3d6   : > { %v3047_v50 = vmul.f32 0.6931472, %v4121_v48 }
 0x3d8   : > { %v3048_v51 = vadd.f32 %v3047_v50, %v3034_v13 }
 0x3da   : > { %v3054_v3 = vsub.f32 %v3048_v51, %v3052_v52 }
 0x3dc   : > { %v3055_v61 = vsel %vm3032_vm11, %v3054_v3, 0.0 }
 0x3dd   : > { %v3056_v1 = vsel %vm3008_vm5, %v3055_v61, 0.0 }
 0x3de   : > { %v3057_v53 = vrot.slane %v3056_v1, 4 }
 0x3e0   : > { %v3058_v54 = vadd.f32 %v3057_v53, %v3056_v1 }
 0x3e2   : > { %v3059_v55 = vrot.slane %v3058_v54, 2 }
 0x3e4   : > { %v3060_v56 = vadd.f32 %v3059_v55, %v3058_v54 }
 0x3e6   : > { %v3061_v57 = vrot.slane %v3060_v56, 1 }
 0x3e8   : > { %v3062_v58 = vadd.f32 %v3061_v57, %v3060_v56 }
 0x3ea   : > { %v3063_v14 = vadd.f32 %v3062_v58, %v3053_v37 }
 0x3ec   : > { %3065 = vst.msk [vmem:[#allocation6] sm:$0x1] %vm3064_vm12, %v3063_v14 }
 0x3f3   : > { %v3070_v59 = vld [vmem:[#allocation6] sm:$0x1] }
 0x3f4   : > { %v3071_v60 = vmul.f32 0.5, %v3070_v59 }
 0x3f6   : > { %3072 = vst.msk [vmem:[#allocation21] sm:$0x1] %vm3064_vm12, %v3071_v60 }
 0x3f7 PF: > { %s4872_s17 = sadd.s32 4294967295, %s4358_s13   ;;  %s4370_s23 = smov [#allocation21]  }
 0x3f8   : > { %p4809_p9 = scmp.eq.s32.totalorder %s4872_s17, 1  ;;  %s3087_s27 = sshll.u32 %s4370_s23, 4  ;;  %s3088_s27 = int_to_ptr.vmem [resolvable:$true] %s3087_s27 }
 0x3f9   : > { %s4290_s25 = scalar_lea.vmem %s3088_s27, 16  ;;  %s4296_s22 = scalar_lea.vmem %s3088_s27, 32 }
 0x3fa   : > { %p4291_p11 = scmp.ne.s32.totalorder %s3088_s27, %s4290_s25  ;;  %p4297_p0 = scmp.lt.s32.totalorder %s3088_s27, %s3088_s27 }
 0x3fb   : > { %p4298_p1 = scmp.lt.s32.totalorder %s4296_s22, %s4290_s25 }
 0x3fc   : > { %p4292_p12 = pnand %p4291_p11, %p4809_p9 }
 0x3fd   : > { %p4299_p2 = por %p4298_p1, %p4297_p0 }
 0x3fe   : > { %p4293_p13 = pneg %p4292_p12 }
 0x400   : > { %p4300_p5 = pnand %p4299_p2, %p4293_p13 }
 0x402   : > { %4303 = shalt.err (!%p4300_p5)
}
 0x403   : > { %s4304_s28 = scalar_lea.hbm %s4853_s9, 16 }
 0x404   : > { %p4305_p10 = scmp.ne.s32.totalorder %s4853_s9, %s4304_s28  ;;  %p4310_p7 = scmp.lt.u32.totalorder %s4304_s28, %s4853_s9 }
 0x406   : > { %p4306_p3 = pnand %p4305_p10, %p4809_p9 }
 0x408   : > { %p4307_p8 = pneg %p4306_p3 }
 0x40a   : > { %p4312_p4 = pnand %p4310_p7, %p4307_p8 }
 0x40c   : > { %4315 = shalt.err (!%p4312_p4)
}
 0x40d   : > { %3607 = dma.vmem_to_hbm [thread:$0]  (%p4809_p9), %s3088_s27, 16, %s4853_s9, [#allocation12]  }
 0x40e   : > { %4345 = dma.done.wait (%p4809_p9), [#allocation12], 16  }
 0x40f   : > { %4347 = vsyncadd (%p4809_p9), [#allocation12], 4294967280 }
 0x410 PF: > { %s28_s13 = sadd.s32 1, %s4358_s13   ;;  %s4874_s30 = sld [smem:[#allocation27_spill]] }
 0x411   : > { %p25_p6 = scmp.ge.s32.totalorder %s28_s13, 4   ;;  %s4875_s11 = smov %s4354_s12 }
 0x413   :  { %27 = sbr.rel (!%p25_p6) target bundleno = 10 (0xa), region = 146 }
 0x416   : > { %s4876_s12 = smov %s4874_s30 }
 0x41a   :  { %3107 = vsyncpa [#allocation11], 1 }
 0x41b   :  { %3109 = vsyncpa [#allocation11 + $0x1], 1 }
 0x41c   :  { %3110 = vsyncpa [#allocation14], 1 }
 0x41d   :  { %3111 = vsyncpa [#allocation17], 1 }
 0x41e   :  { %3112 = vsyncpa [#allocation20], 1 }
 0x41f   :  { %3113 = vsyncpa [#allocation12], 1 }
 0x420   :  { %3115 = vsyncpa [#allocation12 + $0x1], 1 }

</bundles_post_ra>
